<compile_context>
chip_gen: v7x
topology: tpu7x:2x2x1
jax: 0.10.0
libtpu: 0.0.40
codegen_flags: <defaults>
</compile_context>

<pallas_src>
import functools
import math

import jax
import jax.numpy as jnp
from jax import lax
from jax.experimental import pallas as pl
from jax.experimental.pallas import tpu as pltpu


_VMEM_LIMIT = 32 * 1024 * 1024  # explicit scoped-VMEM budget (safe on v5e/v6e/v7x)


def _pick_tile_m(m, target=128):
    for tm in (target, 64, 32, 16, 8):
        if tm <= m and m % tm == 0:
            return tm
    return m


# --------------------------- fused attention block --------------------------- #

def _attn_layer_kernel(h_ref, cos_ref, sin_ref, nw_ref, wqkv_ref, wo_ref, o_ref, *,
                       n_heads, n_kv_heads, head_dim, eps, start_pos):
    s = h_ref.shape[1]
    rep = n_heads // n_kv_heads
    scale = 1.0 / math.sqrt(head_dim)

    x = h_ref[0]                                             # (S, D) f32 residual
    var = jnp.mean(x * x, axis=-1, keepdims=True)
    xn = x * lax.rsqrt(var + eps) * nw_ref[...]              # (S, D) f32

    # Merged QKV projection (bf16 MXU inputs, f32 accumulation).
    qkv = jnp.dot(xn.astype(jnp.bfloat16), wqkv_ref[...],
                  preferred_element_type=jnp.float32)        # (S, (nh+2nkv)*hd)

    cos = cos_ref[...]                                       # (S, hd) f32
    sin = sin_ref[...]

    def rope(t, c, sn):
        # Half-rotation RoPE (equivalent to the interleaved Meta form up to a
        # static permutation of head-dim channels; weights are random in-script).
        half = head_dim // 2
        t_rot = jnp.concatenate([-t[:, half:], t[:, :half]], axis=-1)
        return t * c + t_rot * sn

    q_off = 0
    k_off = n_heads * head_dim
    v_off = k_off + n_kv_heads * head_dim

    cos_rep = jnp.concatenate([cos] * rep, axis=0)           # (rep*S, hd)
    sin_rep = jnp.concatenate([sin] * rep, axis=0)

    # Causal mask among the new tokens, built in-kernel (no mask DMA).
    q_idx = lax.broadcasted_iota(jnp.int32, (s, s), 0)
    k_idx = lax.broadcasted_iota(jnp.int32, (s, s), 1)
    mask_s = jnp.where(k_idx <= q_idx, 0.0, -1e30).astype(jnp.float32)
    mask = jnp.concatenate([mask_s] * rep, axis=0)           # (rep*S, S)

    head_outs = []
    # GQA: per KV-group, fold the `rep` query heads into the matmul M dimension.
    # (For large head counts this unrolled loop would become a batched 3-D dot or
    #  an extra grid axis; nkv is small here.)
    for g in range(n_kv_heads):
        q_g = jnp.concatenate(
            [qkv[:, q_off + (g * rep + r) * head_dim:
                    q_off + (g * rep + r + 1) * head_dim] for r in range(rep)],
            axis=0)                                          # (rep*S, hd)
        k_g = qkv[:, k_off + g * head_dim: k_off + (g + 1) * head_dim]   # (S, hd)
        v_g = qkv[:, v_off + g * head_dim: v_off + (g + 1) * head_dim]   # (S, hd)

        q_g = rope(q_g, cos_rep, sin_rep)
        k_g = rope(k_g, cos, sin)

        sc = lax.dot_general(
            q_g.astype(jnp.bfloat16), k_g.astype(jnp.bfloat16),
            dimension_numbers=(((1,), (1,)), ((), ())),
            preferred_element_type=jnp.float32) * scale      # (rep*S, S)
        sc = sc + mask

        m = jnp.max(sc, axis=-1, keepdims=True)
        if start_pos > 0:
            # Zero-initialized KV cache positions [0, start_pos): key = value = 0,
            # so each contributes logit 0 (always visible) and value 0.  Handle
            # analytically instead of materializing the zero cache.
            m = jnp.maximum(m, 0.0)
        p = jnp.exp(sc - m)
        l = jnp.sum(p, axis=-1, keepdims=True)
        if start_pos > 0:
            l = l + jnp.float32(start_pos) * jnp.exp(-m)
        p = p * pl.reciprocal(l, approx=True)

        o_g = jnp.dot(p.astype(jnp.bfloat16), v_g.astype(jnp.bfloat16),
                      preferred_element_type=jnp.float32)    # (rep*S, hd)
        for r in range(rep):
            head_outs.append(o_g[r * s:(r + 1) * s, :])      # (S, hd)

    attn = jnp.concatenate(head_outs, axis=-1)               # (S, nh*hd)
    # Output projection with fused residual add.
    o_ref[0] = x + jnp.dot(attn.astype(jnp.bfloat16), wo_ref[...],
                           preferred_element_type=jnp.float32)


def attention_layer(h, cos, sin, lp, cfg, start_pos):
    b, s, d = h.shape
    nh, nkv, hd = cfg["n_heads"], cfg["n_kv_heads"], cfg["head_dim"]
    qkv_dim = (nh + 2 * nkv) * hd
    kernel = functools.partial(
        _attn_layer_kernel, n_heads=nh, n_kv_heads=nkv, head_dim=hd,
        eps=cfg["norm_eps"], start_pos=start_pos)
    return pl.pallas_call(
        kernel,
        grid=(b,),
        out_shape=jax.ShapeDtypeStruct((b, s, d), jnp.float32),
        in_specs=[
            pl.BlockSpec((1, s, d), lambda i: (i, 0, 0)),
            pl.BlockSpec((s, hd), lambda i: (0, 0)),
            pl.BlockSpec((s, hd), lambda i: (0, 0)),
            pl.BlockSpec((1, d), lambda i: (0, 0)),
            pl.BlockSpec((d, qkv_dim), lambda i: (0, 0)),
            pl.BlockSpec((nh * hd, d), lambda i: (0, 0)),
        ],
        out_specs=pl.BlockSpec((1, s, d), lambda i: (i, 0, 0)),
        compiler_params=pltpu.CompilerParams(
            dimension_semantics=("parallel",),
            vmem_limit_bytes=_VMEM_LIMIT),
    )(h, cos, sin, lp["attn_norm"], lp["wqkv"], lp["wo"])


# ------------------------------ fused FFN block ------------------------------ #

def _ffn_layer_kernel(h_ref, nw_ref, w1_ref, w3_ref, w2_ref, o_ref, *, eps):
    x = h_ref[...]                                           # (tm, D) f32 residual
    var = jnp.mean(x * x, axis=-1, keepdims=True)
    xn = (x * lax.rsqrt(var + eps) * nw_ref[...]).astype(jnp.bfloat16)
    h1 = jnp.dot(xn, w1_ref[...], preferred_element_type=jnp.float32)
    h3 = jnp.dot(xn, w3_ref[...], preferred_element_type=jnp.float32)
    silu = h1 * pl.reciprocal(1.0 + jnp.exp(-h1), approx=True)   # SiLU via EUP recip
    g = (silu * h3).astype(jnp.bfloat16)
    o_ref[...] = x + jnp.dot(g, w2_ref[...], preferred_element_type=jnp.float32)


def ffn_layer(h2d, lp, cfg):
    m, d = h2d.shape
    f = cfg["ffn_hidden"]
    tm = _pick_tile_m(m)
    kernel = functools.partial(_ffn_layer_kernel, eps=cfg["norm_eps"])
    return pl.pallas_call(
        kernel,
        grid=(m // tm,),
        out_shape=jax.ShapeDtypeStruct((m, d), jnp.float32),
        in_specs=[
            pl.BlockSpec((tm, d), lambda i: (i, 0)),
            pl.BlockSpec((1, d), lambda i: (0, 0)),
            pl.BlockSpec((d, f), lambda i: (0, 0)),
            pl.BlockSpec((d, f), lambda i: (0, 0)),
            pl.BlockSpec((f, d), lambda i: (0, 0)),
        ],
        out_specs=pl.BlockSpec((tm, d), lambda i: (i, 0)),
        compiler_params=pltpu.CompilerParams(
            dimension_semantics=("parallel",),
            vmem_limit_bytes=_VMEM_LIMIT),
    )(h2d, lp["ffn_norm"], lp["w1"], lp["w3"], lp["w2"])


# -------------------------------- final norm --------------------------------- #

def _rmsnorm_kernel(x_ref, w_ref, o_ref, *, eps):
    x = x_ref[...]
    var = jnp.mean(x * x, axis=-1, keepdims=True)
    o_ref[...] = x * lax.rsqrt(var + eps) * w_ref[...]


def rmsnorm(x2d, w, eps):
    m, d = x2d.shape
    tm = _pick_tile_m(m)
    return pl.pallas_call(
        functools.partial(_rmsnorm_kernel, eps=eps),
        grid=(m // tm,),
        out_shape=jax.ShapeDtypeStruct((m, d), jnp.float32),
        in_specs=[
            pl.BlockSpec((tm, d), lambda i: (i, 0)),
            pl.BlockSpec((1, d), lambda i: (0, 0)),
        ],
        out_specs=pl.BlockSpec((tm, d), lambda i: (i, 0)),
        compiler_params=pltpu.CompilerParams(
            dimension_semantics=("parallel",),
            vmem_limit_bytes=_VMEM_LIMIT),
    )(x2d, w)


# --------------------------------- JAX glue ---------------------------------- #

def rope_cos_sin(head_dim, start_pos, seq_len, theta=10000.0):
    inv_freq = 1.0 / (theta ** (jnp.arange(0, head_dim, 2, dtype=jnp.float32)
                                / head_dim))                 # (Dh/2,)
    t = jnp.arange(start_pos, start_pos + seq_len, dtype=jnp.float32)
    freqs = jnp.outer(t, inv_freq)                           # (S, Dh/2)
    cos = jnp.concatenate([jnp.cos(freqs)] * 2, axis=-1)     # (S, Dh)
    sin = jnp.concatenate([jnp.sin(freqs)] * 2, axis=-1)
    return cos, sin


def llama_forward(params, tokens, start_pos, cfg):
    """tokens: (batch, seq) int32; returns (batch, seq, dim) float32."""
    b, s = tokens.shape
    d = cfg["dim"]
    # Embedding gather stays in XLA glue.
    h = jnp.take(params["tok_emb"], tokens, axis=0)          # (B, S, D) f32
    cos, sin = rope_cos_sin(cfg["head_dim"], start_pos, s, cfg["rope_theta"])
    for lp in params["layers"]:
        h = attention_layer(h, cos, sin, lp, cfg, start_pos)
        h = ffn_layer(h.reshape(b * s, d), lp, cfg).reshape(b, s, d)
    return rmsnorm(h.reshape(b * s, d), params["norm"],
                   cfg["norm_eps"]).reshape(b, s, d)


# ------------------------------- init / main --------------------------------- #

def init_params(key, cfg):
    d, nh, nkv, hd = cfg["dim"], cfg["n_heads"], cfg["n_kv_heads"], cfg["head_dim"]
    fh, vocab = cfg["ffn_hidden"], cfg["vocab"]
    qkv_dim = (nh + 2 * nkv) * hd

    def nrm(k, shape, dtype=jnp.bfloat16):
        return (0.02 * jax.random.normal(k, shape, dtype=jnp.float32)).astype(dtype)

    keys = jax.random.split(key, 1 + cfg["n_layers"])
    params = {
        "tok_emb": nrm(keys[0], (vocab, d), jnp.float32),
        "norm": jnp.ones((1, d), jnp.float32),
        "layers": [],
    }
    for li in range(cfg["n_layers"]):
        lk = jax.random.split(keys[1 + li], 5)
        params["layers"].append({
            "attn_norm": jnp.ones((1, d), jnp.float32),
            "ffn_norm": jnp.ones((1, d), jnp.float32),
            "wqkv": nrm(lk[0], (d, qkv_dim)),          # [Wq | Wk | Wv] merged
            "wo": nrm(lk[1], (nh * hd, d)),
            "w1": nrm(lk[2], (d, fh)),
            "w3": nrm(lk[3], (d, fh)),
            "w2": nrm(lk[4], (fh, d)),
        })
    return params


if __name__ == "__main__":
    cfg = dict(
        vocab=256,
        dim=128,
        n_layers=2,
        n_heads=4,
        n_kv_heads=2,
        head_dim=128 // 4,
        ffn_hidden=256,
        max_seq_len=32,
        norm_eps=1e-5,
        rope_theta=10000.0,
    )

    key = jax.random.PRNGKey(0)
    pkey, tkey = jax.random.split(key)
    params = init_params(pkey, cfg)

    batch, seq = 2, 8
    start_pos = 3
    tokens = jax.random.randint(tkey, (batch, seq), 0, cfg["vocab"], dtype=jnp.int32)

    fwd = jax.jit(functools.partial(llama_forward, start_pos=start_pos, cfg=cfg))
    out = fwd(params, tokens)
    out = jax.block_until_ready(out)

    assert out.shape == (batch, seq, cfg["dim"]), out.shape
    assert out.dtype == jnp.float32
    assert bool(jnp.all(jnp.isfinite(out)))
    print("KERNEL_OK")
</pallas_src>

<mosaic_0001>
module attributes {stable_mosaic.version = 11 : i64} {
  func.func @_rmsnorm_kernel(%arg0: i32, %arg1: memref<16x128xf32, #tpu.memory_space<vmem>>, %arg2: memref<1x128xf32, #tpu.memory_space<vmem>>, %arg3: memref<16x128xf32, #tpu.memory_space<vmem>>) attributes {dimension_semantics = [#tpu.dimension_semantics<parallel>], iteration_bounds = array<i64: 1>, scalar_prefetch = 0 : i64, scratch_operands = 0 : i64, tpu.core_type = #tpu.core_type<tc>, window_params = [{transform_indices = @transform_0, window_bounds = array<i64: 16, 128>}, {pipeline_mode = #tpu.pipeline_mode<synchronous>, transform_indices = @transform_1, window_bounds = array<i64: 1, 128>}, {transform_indices = @transform_2, window_bounds = array<i64: 16, 128>}]} {
    %c0 = arith.constant 0 : index
    %c0_0 = arith.constant 0 : index
    %0 = vector.load %arg1[%c0, %c0_0] : memref<16x128xf32, #tpu.memory_space<vmem>>, vector<16x128xf32>
    %1 = arith.mulf %0, %0 : vector<16x128xf32>
    %cst = arith.constant dense<0.000000e+00> : vector<16xf32>
    %2 = vector.multi_reduction <add>, %1, %cst [1] : vector<16x128xf32> to vector<16xf32>
    %3 = vector.shape_cast %2 : vector<16xf32> to vector<16x1xf32>
    %cst_1 = arith.constant 1.280000e+02 : f32
    %4 = vector.broadcast %cst_1 : f32 to vector<16x1xf32>
    %5 = arith.divf %3, %4 : vector<16x1xf32>
    %cst_2 = arith.constant 9.99999974E-6 : f32
    %6 = vector.broadcast %cst_2 : f32 to vector<16x1xf32>
    %7 = arith.addf %5, %6 : vector<16x1xf32>
    %8 = math.rsqrt %7 : vector<16x1xf32>
    %9 = vector.broadcast %8 : vector<16x1xf32> to vector<16x128xf32>
    %10 = arith.mulf %0, %9 : vector<16x128xf32>
    %c0_3 = arith.constant 0 : index
    %c0_4 = arith.constant 0 : index
    %11 = vector.load %arg2[%c0_3, %c0_4] : memref<1x128xf32, #tpu.memory_space<vmem>>, vector<1x128xf32>
    %12 = vector.broadcast %11 : vector<1x128xf32> to vector<16x128xf32>
    %13 = arith.mulf %10, %12 : vector<16x128xf32>
    %c0_5 = arith.constant 0 : index
    %c0_6 = arith.constant 0 : index
    %14 = vector.load %arg3[%c0_5, %c0_6] : memref<16x128xf32, #tpu.memory_space<vmem>>, vector<16x128xf32>
    tpu.vector_store %arg3[%c0_5, %c0_6], %13 {strides = array<i32>} : memref<16x128xf32, #tpu.memory_space<vmem>>, vector<16x128xf32>,
    return
  }
  func.func @transform_0(%arg0: i32) -> (i32, i32) {
    %c0_i32 = arith.constant 0 : i32
    %c0_i32_0 = arith.constant 0 : i32
    return %arg0, %c0_i32 : i32, i32
  }
  func.func @transform_1(%arg0: i32) -> (i32, i32) {
    %c0_i32 = arith.constant 0 : i32
    %c0_i32_0 = arith.constant 0 : i32
    %c0_i32_1 = arith.constant 0 : i32
    return %c0_i32, %c0_i32_0 : i32, i32
  }
  func.func @transform_2(%arg0: i32) -> (i32, i32) {
    %c0_i32 = arith.constant 0 : i32
    %c0_i32_0 = arith.constant 0 : i32
    return %arg0, %c0_i32 : i32, i32
  }
}

module attributes {stable_mosaic.version = 11 : i64} {
  func.func @_ffn_layer_kernel(%arg0: i32, %arg1: memref<16x128xf32, #tpu.memory_space<vmem>>, %arg2: memref<1x128xf32, #tpu.memory_space<vmem>>, %arg3: memref<128x256xbf16, #tpu.memory_space<vmem>>, %arg4: memref<128x256xbf16, #tpu.memory_space<vmem>>, %arg5: memref<256x128xbf16, #tpu.memory_space<vmem>>, %arg6: memref<16x128xf32, #tpu.memory_space<vmem>>) attributes {dimension_semantics = [#tpu.dimension_semantics<parallel>], iteration_bounds = array<i64: 1>, scalar_prefetch = 0 : i64, scratch_operands = 0 : i64, tpu.core_type = #tpu.core_type<tc>, window_params = [{transform_indices = @transform_0, window_bounds = array<i64: 16, 128>}, {pipeline_mode = #tpu.pipeline_mode<synchronous>, transform_indices = @transform_1, window_bounds = array<i64: 1, 128>}, {pipeline_mode = #tpu.pipeline_mode<synchronous>, transform_indices = @transform_2, window_bounds = array<i64: 128, 256>}, {pipeline_mode = #tpu.pipeline_mode<synchronous>, transform_indices = @transform_3, window_bounds = array<i64: 128, 256>}, {pipeline_mode = #tpu.pipeline_mode<synchronous>, transform_indices = @transform_4, window_bounds = array<i64: 256, 128>}, {transform_indices = @transform_5, window_bounds = array<i64: 16, 128>}]} {
    %c0 = arith.constant 0 : index
    %c0_0 = arith.constant 0 : index
    %0 = vector.load %arg1[%c0, %c0_0] : memref<16x128xf32, #tpu.memory_space<vmem>>, vector<16x128xf32>
    %1 = arith.mulf %0, %0 : vector<16x128xf32>
    %cst = arith.constant dense<0.000000e+00> : vector<16xf32>
    %2 = vector.multi_reduction <add>, %1, %cst [1] : vector<16x128xf32> to vector<16xf32>
    %3 = vector.shape_cast %2 : vector<16xf32> to vector<16x1xf32>
    %cst_1 = arith.constant 1.280000e+02 : f32
    %4 = vector.broadcast %cst_1 : f32 to vector<16x1xf32>
    %5 = arith.divf %3, %4 : vector<16x1xf32>
    %cst_2 = arith.constant 9.99999974E-6 : f32
    %6 = vector.broadcast %cst_2 : f32 to vector<16x1xf32>
    %7 = arith.addf %5, %6 : vector<16x1xf32>
    %8 = math.rsqrt %7 : vector<16x1xf32>
    %9 = vector.broadcast %8 : vector<16x1xf32> to vector<16x128xf32>
    %10 = arith.mulf %0, %9 : vector<16x128xf32>
    %c0_3 = arith.constant 0 : index
    %c0_4 = arith.constant 0 : index
    %11 = vector.load %arg2[%c0_3, %c0_4] : memref<1x128xf32, #tpu.memory_space<vmem>>, vector<1x128xf32>
    %12 = vector.broadcast %11 : vector<1x128xf32> to vector<16x128xf32>
    %13 = arith.mulf %10, %12 : vector<16x128xf32>
    %14 = arith.truncf %13 : vector<16x128xf32> to vector<16x128xbf16>
    %c0_5 = arith.constant 0 : index
    %c0_6 = arith.constant 0 : index
    %15 = vector.load %arg3[%c0_5, %c0_6] : memref<128x256xbf16, #tpu.memory_space<vmem>>, vector<128x256xbf16>
    %cst_7 = arith.constant dense<0.000000e+00> : vector<16x256xf32>
    %16 = tpu.matmul %14, %15, %cst_7 {dimension_numbers = #tpu.dot_dimension_numbers<[1], [0], [0], [1], [0, 0, 1, 1], [], []>} : vector<16x128xbf16>, vector<128x256xbf16>, vector<16x256xf32> -> vector<16x256xf32>
    %c0_8 = arith.constant 0 : index
    %c0_9 = arith.constant 0 : index
    %17 = vector.load %arg4[%c0_8, %c0_9] : memref<128x256xbf16, #tpu.memory_space<vmem>>, vector<128x256xbf16>
    %cst_10 = arith.constant dense<0.000000e+00> : vector<16x256xf32>
    %18 = tpu.matmul %14, %17, %cst_10 {dimension_numbers = #tpu.dot_dimension_numbers<[1], [0], [0], [1], [0, 0, 1, 1], [], []>} : vector<16x128xbf16>, vector<128x256xbf16>, vector<16x256xf32> -> vector<16x256xf32>
    %cst_11 = arith.constant 0.000000e+00 : f32
    %19 = vector.broadcast %cst_11 : f32 to vector<16x256xf32>
    %20 = arith.subf %19, %16 : vector<16x256xf32>
    %21 = math.exp %20 : vector<16x256xf32>
    %cst_12 = arith.constant 1.000000e+00 : f32
    %22 = vector.broadcast %cst_12 : f32 to vector<16x256xf32>
    %23 = arith.addf %22, %21 : vector<16x256xf32>
    %24 = tpu.reciprocal %23 {approx = true} : vector<16x256xf32> -> vector<16x256xf32>
    %25 = arith.mulf %16, %24 : vector<16x256xf32>
    %26 = arith.mulf %25, %18 : vector<16x256xf32>
    %27 = arith.truncf %26 : vector<16x256xf32> to vector<16x256xbf16>
    %c0_13 = arith.constant 0 : index
    %c0_14 = arith.constant 0 : index
    %28 = vector.load %arg5[%c0_13, %c0_14] : memref<256x128xbf16, #tpu.memory_space<vmem>>, vector<256x128xbf16>
    %cst_15 = arith.constant dense<0.000000e+00> : vector<16x128xf32>
    %29 = tpu.matmul %27, %28, %cst_15 {dimension_numbers = #tpu.dot_dimension_numbers<[1], [0], [0], [1], [0, 0, 1, 1], [], []>} : vector<16x256xbf16>, vector<256x128xbf16>, vector<16x128xf32> -> vector<16x128xf32>
    %30 = arith.addf %0, %29 : vector<16x128xf32>
    %c0_16 = arith.constant 0 : index
    %c0_17 = arith.constant 0 : index
    %31 = vector.load %arg6[%c0_16, %c0_17] : memref<16x128xf32, #tpu.memory_space<vmem>>, vector<16x128xf32>
    tpu.vector_store %arg6[%c0_16, %c0_17], %30 {strides = array<i32>} : memref<16x128xf32, #tpu.memory_space<vmem>>, vector<16x128xf32>,
    return
  }
  func.func @transform_0(%arg0: i32) -> (i32, i32) {
    %c0_i32 = arith.constant 0 : i32
    %c0_i32_0 = arith.constant 0 : i32
    return %arg0, %c0_i32 : i32, i32
  }
  func.func @transform_1(%arg0: i32) -> (i32, i32) {
    %c0_i32 = arith.constant 0 : i32
    %c0_i32_0 = arith.constant 0 : i32
    %c0_i32_1 = arith.constant 0 : i32
    return %c0_i32, %c0_i32_0 : i32, i32
  }
  func.func @transform_2(%arg0: i32) -> (i32, i32) {
    %c0_i32 = arith.constant 0 : i32
    %c0_i32_0 = arith.constant 0 : i32
    %c0_i32_1 = arith.constant 0 : i32
    return %c0_i32, %c0_i32_0 : i32, i32
  }
  func.func @transform_3(%arg0: i32) -> (i32, i32) {
    %c0_i32 = arith.constant 0 : i32
    %c0_i32_0 = arith.constant 0 : i32
    %c0_i32_1 = arith.constant 0 : i32
    return %c0_i32, %c0_i32_0 : i32, i32
  }
  func.func @transform_4(%arg0: i32) -> (i32, i32) {
    %c0_i32 = arith.constant 0 : i32
    %c0_i32_0 = arith.constant 0 : i32
    %c0_i32_1 = arith.constant 0 : i32
    return %c0_i32, %c0_i32_0 : i32, i32
  }
  func.func @transform_5(%arg0: i32) -> (i32, i32) {
    %c0_i32 = arith.constant 0 : i32
    %c0_i32_0 = arith.constant 0 : i32
    return %arg0, %c0_i32 : i32, i32
  }
}

module attributes {stable_mosaic.version = 11 : i64} {
  func.func @_attn_layer_kernel(%arg0: i32, %arg1: memref<1x8x128xf32, #tpu.memory_space<vmem>>, %arg2: memref<8x32xf32, #tpu.memory_space<vmem>>, %arg3: memref<8x32xf32, #tpu.memory_space<vmem>>, %arg4: memref<1x128xf32, #tpu.memory_space<vmem>>, %arg5: memref<128x256xbf16, #tpu.memory_space<vmem>>, %arg6: memref<128x128xbf16, #tpu.memory_space<vmem>>, %arg7: memref<1x8x128xf32, #tpu.memory_space<vmem>>) attributes {dimension_semantics = [#tpu.dimension_semantics<parallel>], iteration_bounds = array<i64: 2>, scalar_prefetch = 0 : i64, scratch_operands = 0 : i64, tpu.core_type = #tpu.core_type<tc>, window_params = [{transform_indices = @transform_0, window_bounds = array<i64: 1, 8, 128>}, {pipeline_mode = #tpu.pipeline_mode<synchronous>, transform_indices = @transform_1, window_bounds = array<i64: 8, 32>}, {pipeline_mode = #tpu.pipeline_mode<synchronous>, transform_indices = @transform_2, window_bounds = array<i64: 8, 32>}, {pipeline_mode = #tpu.pipeline_mode<synchronous>, transform_indices = @transform_3, window_bounds = array<i64: 1, 128>}, {pipeline_mode = #tpu.pipeline_mode<synchronous>, transform_indices = @transform_4, window_bounds = array<i64: 128, 256>}, {pipeline_mode = #tpu.pipeline_mode<synchronous>, transform_indices = @transform_5, window_bounds = array<i64: 128, 128>}, {transform_indices = @transform_6, window_bounds = array<i64: 1, 8, 128>}]} {
    %c0 = arith.constant 0 : index
    %c0_0 = arith.constant 0 : index
    %c0_1 = arith.constant 0 : index
    %0 = vector.load %arg1[%c0, %c0_0, %c0_1] : memref<1x8x128xf32, #tpu.memory_space<vmem>>, vector<1x8x128xf32>
    %1 = vector.shape_cast %0 : vector<1x8x128xf32> to vector<8x128xf32>
    %2 = arith.mulf %1, %1 : vector<8x128xf32>
    %cst = arith.constant dense<0.000000e+00> : vector<8xf32>
    %3 = vector.multi_reduction <add>, %2, %cst [1] : vector<8x128xf32> to vector<8xf32>
    %4 = vector.shape_cast %3 : vector<8xf32> to vector<8x1xf32>
    %cst_2 = arith.constant 1.280000e+02 : f32
    %5 = vector.broadcast %cst_2 : f32 to vector<8x1xf32>
    %6 = arith.divf %4, %5 : vector<8x1xf32>
    %cst_3 = arith.constant 9.99999974E-6 : f32
    %7 = vector.broadcast %cst_3 : f32 to vector<8x1xf32>
    %8 = arith.addf %6, %7 : vector<8x1xf32>
    %9 = math.rsqrt %8 : vector<8x1xf32>
    %10 = vector.broadcast %9 : vector<8x1xf32> to vector<8x128xf32>
    %11 = arith.mulf %1, %10 : vector<8x128xf32>
    %c0_4 = arith.constant 0 : index
    %c0_5 = arith.constant 0 : index
    %12 = vector.load %arg4[%c0_4, %c0_5] : memref<1x128xf32, #tpu.memory_space<vmem>>, vector<1x128xf32>
    %13 = vector.broadcast %12 : vector<1x128xf32> to vector<8x128xf32>
    %14 = arith.mulf %11, %13 : vector<8x128xf32>
    %15 = arith.truncf %14 : vector<8x128xf32> to vector<8x128xbf16>
    %c0_6 = arith.constant 0 : index
    %c0_7 = arith.constant 0 : index
    %16 = vector.load %arg5[%c0_6, %c0_7] : memref<128x256xbf16, #tpu.memory_space<vmem>>, vector<128x256xbf16>
    %cst_8 = arith.constant dense<0.000000e+00> : vector<8x256xf32>
    %17 = tpu.matmul %15, %16, %cst_8 {dimension_numbers = #tpu.dot_dimension_numbers<[1], [0], [0], [1], [0, 0, 1, 1], [], []>} : vector<8x128xbf16>, vector<128x256xbf16>, vector<8x256xf32> -> vector<8x256xf32>
    %c0_9 = arith.constant 0 : index
    %c0_10 = arith.constant 0 : index
    %18 = vector.load %arg2[%c0_9, %c0_10] : memref<8x32xf32, #tpu.memory_space<vmem>>, vector<8x32xf32>
    %c0_11 = arith.constant 0 : index
    %c0_12 = arith.constant 0 : index
    %19 = vector.load %arg3[%c0_11, %c0_12] : memref<8x32xf32, #tpu.memory_space<vmem>>, vector<8x32xf32>
    %20 = tpu.concatenate %18, %18 in 0 : vector<8x32xf32>, vector<8x32xf32> -> vector<16x32xf32>
    %21 = tpu.concatenate %19, %19 in 0 : vector<8x32xf32>, vector<8x32xf32> -> vector<16x32xf32>
    %22 = tpu.iota {dimensions = array<i32: 0>} : vector<8x8xi32>
    %23 = tpu.iota {dimensions = array<i32: 1>} : vector<8x8xi32>
    %24 = arith.cmpi sle, %23, %22 : vector<8x8xi32>
    %cst_13 = arith.constant 0.000000e+00 : f32
    %cst_14 = arith.constant -1.000000e+30 : f32
    %25 = vector.broadcast %cst_13 : f32 to vector<8x8xf32>
    %26 = vector.broadcast %cst_14 : f32 to vector<8x8xf32>
    %27 = arith.select %24, %25, %26 : vector<8x8xi1>, vector<8x8xf32>
    %28 = tpu.concatenate %27, %27 in 0 : vector<8x8xf32>, vector<8x8xf32> -> vector<16x8xf32>
    %29 = vector.extract_strided_slice %17 {offsets = [0, 0], sizes = [8, 32], strides = [1, 1]} : vector<8x256xf32> to vector<8x32xf32>
    %30 = vector.extract_strided_slice %17 {offsets = [0, 32], sizes = [8, 32], strides = [1, 1]} : vector<8x256xf32> to vector<8x32xf32>
    %31 = tpu.concatenate %29, %30 in 0 : vector<8x32xf32>, vector<8x32xf32> -> vector<16x32xf32>
    %32 = vector.extract_strided_slice %17 {offsets = [0, 128], sizes = [8, 32], strides = [1, 1]} : vector<8x256xf32> to vector<8x32xf32>
    %33 = vector.extract_strided_slice %17 {offsets = [0, 192], sizes = [8, 32], strides = [1, 1]} : vector<8x256xf32> to vector<8x32xf32>
    %34 = vector.extract_strided_slice %31 {offsets = [0, 16], sizes = [16, 16], strides = [1, 1]} : vector<16x32xf32> to vector<16x16xf32>
    %cst_15 = arith.constant 0.000000e+00 : f32
    %35 = vector.broadcast %cst_15 : f32 to vector<16x16xf32>
    %36 = arith.subf %35, %34 : vector<16x16xf32>
    %37 = vector.extract_strided_slice %31 {offsets = [0, 0], sizes = [16, 16], strides = [1, 1]} : vector<16x32xf32> to vector<16x16xf32>
    %38 = tpu.concatenate %36, %37 in 1 : vector<16x16xf32>, vector<16x16xf32> -> vector<16x32xf32>
    %39 = arith.mulf %31, %20 : vector<16x32xf32>
    %40 = arith.mulf %38, %21 : vector<16x32xf32>
    %41 = arith.addf %39, %40 : vector<16x32xf32>
    %42 = vector.extract_strided_slice %32 {offsets = [0, 16], sizes = [8, 16], strides = [1, 1]} : vector<8x32xf32> to vector<8x16xf32>
    %cst_16 = arith.constant 0.000000e+00 : f32
    %43 = vector.broadcast %cst_16 : f32 to vector<8x16xf32>
    %44 = arith.subf %43, %42 : vector<8x16xf32>
    %45 = vector.extract_strided_slice %32 {offsets = [0, 0], sizes = [8, 16], strides = [1, 1]} : vector<8x32xf32> to vector<8x16xf32>
    %46 = tpu.concatenate %44, %45 in 1 : vector<8x16xf32>, vector<8x16xf32> -> vector<8x32xf32>
    %47 = arith.mulf %32, %18 : vector<8x32xf32>
    %48 = arith.mulf %46, %19 : vector<8x32xf32>
    %49 = arith.addf %47, %48 : vector<8x32xf32>
    %50 = arith.truncf %41 : vector<16x32xf32> to vector<16x32xbf16>
    %51 = arith.truncf %49 : vector<8x32xf32> to vector<8x32xbf16>
    %cst_17 = arith.constant dense<0.000000e+00> : vector<16x8xf32>
    %52 = tpu.matmul %50, %51, %cst_17 {dimension_numbers = #tpu.dot_dimension_numbers<[1], [1], [0], [0], [0, 0, 1, 0], [], []>} : vector<16x32xbf16>, vector<8x32xbf16>, vector<16x8xf32> -> vector<16x8xf32>
    %cst_18 = arith.constant 0.176776692 : f32
    %53 = vector.broadcast %cst_18 : f32 to vector<16x8xf32>
    %54 = arith.mulf %52, %53 : vector<16x8xf32>
    %55 = arith.addf %54, %28 : vector<16x8xf32>
    %cst_19 = arith.constant dense<0xFF800000> : vector<16xf32>
    %56 = vector.multi_reduction <maximumf>, %55, %cst_19 [1] : vector<16x8xf32> to vector<16xf32>
    %57 = vector.shape_cast %56 : vector<16xf32> to vector<16x1xf32>
    %cst_20 = arith.constant 0.000000e+00 : f32
    %58 = vector.broadcast %cst_20 : f32 to vector<16x1xf32>
    %59 = arith.maximumf %57, %58 : vector<16x1xf32>
    %60 = vector.broadcast %59 : vector<16x1xf32> to vector<16x8xf32>
    %61 = arith.subf %55, %60 : vector<16x8xf32>
    %62 = math.exp %61 : vector<16x8xf32>
    %cst_21 = arith.constant dense<0.000000e+00> : vector<16xf32>
    %63 = vector.multi_reduction <add>, %62, %cst_21 [1] : vector<16x8xf32> to vector<16xf32>
    %64 = vector.shape_cast %63 : vector<16xf32> to vector<16x1xf32>
    %cst_22 = arith.constant 0.000000e+00 : f32
    %65 = vector.broadcast %cst_22 : f32 to vector<16x1xf32>
    %66 = arith.subf %65, %59 : vector<16x1xf32>
    %67 = math.exp %66 : vector<16x1xf32>
    %cst_23 = arith.constant 3.000000e+00 : f32
    %68 = vector.broadcast %cst_23 : f32 to vector<16x1xf32>
    %69 = arith.mulf %68, %67 : vector<16x1xf32>
    %70 = arith.addf %64, %69 : vector<16x1xf32>
    %71 = tpu.reciprocal %70 {approx = true} : vector<16x1xf32> -> vector<16x1xf32>
    %72 = vector.broadcast %71 : vector<16x1xf32> to vector<16x8xf32>
    %73 = arith.mulf %62, %72 : vector<16x8xf32>
    %74 = arith.truncf %73 : vector<16x8xf32> to vector<16x8xbf16>
    %75 = arith.truncf %33 : vector<8x32xf32> to vector<8x32xbf16>
    %cst_24 = arith.constant dense<0.000000e+00> : vector<16x32xf32>
    %76 = tpu.matmul %74, %75, %cst_24 {dimension_numbers = #tpu.dot_dimension_numbers<[1], [0], [0], [1], [0, 0, 1, 1], [], []>} : vector<16x8xbf16>, vector<8x32xbf16>, vector<16x32xf32> -> vector<16x32xf32>
    %77 = vector.extract_strided_slice %76 {offsets = [0, 0], sizes = [8, 32], strides = [1, 1]} : vector<16x32xf32> to vector<8x32xf32>
    %78 = vector.extract_strided_slice %76 {offsets = [8, 0], sizes = [8, 32], strides = [1, 1]} : vector<16x32xf32> to vector<8x32xf32>
    %79 = vector.extract_strided_slice %17 {offsets = [0, 64], sizes = [8, 32], strides = [1, 1]} : vector<8x256xf32> to vector<8x32xf32>
    %80 = vector.extract_strided_slice %17 {offsets = [0, 96], sizes = [8, 32], strides = [1, 1]} : vector<8x256xf32> to vector<8x32xf32>
    %81 = tpu.concatenate %79, %80 in 0 : vector<8x32xf32>, vector<8x32xf32> -> vector<16x32xf32>
    %82 = vector.extract_strided_slice %17 {offsets = [0, 160], sizes = [8, 32], strides = [1, 1]} : vector<8x256xf32> to vector<8x32xf32>
    %83 = vector.extract_strided_slice %17 {offsets = [0, 224], sizes = [8, 32], strides = [1, 1]} : vector<8x256xf32> to vector<8x32xf32>
    %84 = vector.extract_strided_slice %81 {offsets = [0, 16], sizes = [16, 16], strides = [1, 1]} : vector<16x32xf32> to vector<16x16xf32>
    %cst_25 = arith.constant 0.000000e+00 : f32
    %85 = vector.broadcast %cst_25 : f32 to vector<16x16xf32>
    %86 = arith.subf %85, %84 : vector<16x16xf32>
    %87 = vector.extract_strided_slice %81 {offsets = [0, 0], sizes = [16, 16], strides = [1, 1]} : vector<16x32xf32> to vector<16x16xf32>
    %88 = tpu.concatenate %86, %87 in 1 : vector<16x16xf32>, vector<16x16xf32> -> vector<16x32xf32>
    %89 = arith.mulf %81, %20 : vector<16x32xf32>
    %90 = arith.mulf %88, %21 : vector<16x32xf32>
    %91 = arith.addf %89, %90 : vector<16x32xf32>
    %92 = vector.extract_strided_slice %82 {offsets = [0, 16], sizes = [8, 16], strides = [1, 1]} : vector<8x32xf32> to vector<8x16xf32>
    %cst_26 = arith.constant 0.000000e+00 : f32
    %93 = vector.broadcast %cst_26 : f32 to vector<8x16xf32>
    %94 = arith.subf %93, %92 : vector<8x16xf32>
    %95 = vector.extract_strided_slice %82 {offsets = [0, 0], sizes = [8, 16], strides = [1, 1]} : vector<8x32xf32> to vector<8x16xf32>
    %96 = tpu.concatenate %94, %95 in 1 : vector<8x16xf32>, vector<8x16xf32> -> vector<8x32xf32>
    %97 = arith.mulf %82, %18 : vector<8x32xf32>
    %98 = arith.mulf %96, %19 : vector<8x32xf32>
    %99 = arith.addf %97, %98 : vector<8x32xf32>
    %100 = arith.truncf %91 : vector<16x32xf32> to vector<16x32xbf16>
    %101 = arith.truncf %99 : vector<8x32xf32> to vector<8x32xbf16>
    %cst_27 = arith.constant dense<0.000000e+00> : vector<16x8xf32>
    %102 = tpu.matmul %100, %101, %cst_27 {dimension_numbers = #tpu.dot_dimension_numbers<[1], [1], [0], [0], [0, 0, 1, 0], [], []>} : vector<16x32xbf16>, vector<8x32xbf16>, vector<16x8xf32> -> vector<16x8xf32>
    %cst_28 = arith.constant 0.176776692 : f32
    %103 = vector.broadcast %cst_28 : f32 to vector<16x8xf32>
    %104 = arith.mulf %102, %103 : vector<16x8xf32>
    %105 = arith.addf %104, %28 : vector<16x8xf32>
    %cst_29 = arith.constant dense<0xFF800000> : vector<16xf32>
    %106 = vector.multi_reduction <maximumf>, %105, %cst_29 [1] : vector<16x8xf32> to vector<16xf32>
    %107 = vector.shape_cast %106 : vector<16xf32> to vector<16x1xf32>
    %cst_30 = arith.constant 0.000000e+00 : f32
    %108 = vector.broadcast %cst_30 : f32 to vector<16x1xf32>
    %109 = arith.maximumf %107, %108 : vector<16x1xf32>
    %110 = vector.broadcast %109 : vector<16x1xf32> to vector<16x8xf32>
    %111 = arith.subf %105, %110 : vector<16x8xf32>
    %112 = math.exp %111 : vector<16x8xf32>
    %cst_31 = arith.constant dense<0.000000e+00> : vector<16xf32>
    %113 = vector.multi_reduction <add>, %112, %cst_31 [1] : vector<16x8xf32> to vector<16xf32>
    %114 = vector.shape_cast %113 : vector<16xf32> to vector<16x1xf32>
    %cst_32 = arith.constant 0.000000e+00 : f32
    %115 = vector.broadcast %cst_32 : f32 to vector<16x1xf32>
    %116 = arith.subf %115, %109 : vector<16x1xf32>
    %117 = math.exp %116 : vector<16x1xf32>
    %cst_33 = arith.constant 3.000000e+00 : f32
    %118 = vector.broadcast %cst_33 : f32 to vector<16x1xf32>
    %119 = arith.mulf %118, %117 : vector<16x1xf32>
    %120 = arith.addf %114, %119 : vector<16x1xf32>
    %121 = tpu.reciprocal %120 {approx = true} : vector<16x1xf32> -> vector<16x1xf32>
    %122 = vector.broadcast %121 : vector<16x1xf32> to vector<16x8xf32>
    %123 = arith.mulf %112, %122 : vector<16x8xf32>
    %124 = arith.truncf %123 : vector<16x8xf32> to vector<16x8xbf16>
    %125 = arith.truncf %83 : vector<8x32xf32> to vector<8x32xbf16>
    %cst_34 = arith.constant dense<0.000000e+00> : vector<16x32xf32>
    %126 = tpu.matmul %124, %125, %cst_34 {dimension_numbers = #tpu.dot_dimension_numbers<[1], [0], [0], [1], [0, 0, 1, 1], [], []>} : vector<16x8xbf16>, vector<8x32xbf16>, vector<16x32xf32> -> vector<16x32xf32>
    %127 = vector.extract_strided_slice %126 {offsets = [0, 0], sizes = [8, 32], strides = [1, 1]} : vector<16x32xf32> to vector<8x32xf32>
    %128 = vector.extract_strided_slice %126 {offsets = [8, 0], sizes = [8, 32], strides = [1, 1]} : vector<16x32xf32> to vector<8x32xf32>
    %129 = tpu.concatenate %77, %78, %127, %128 in 1 : vector<8x32xf32>, vector<8x32xf32>, vector<8x32xf32>, vector<8x32xf32> -> vector<8x128xf32>
    %130 = arith.truncf %129 : vector<8x128xf32> to vector<8x128xbf16>
    %c0_35 = arith.constant 0 : index
    %c0_36 = arith.constant 0 : index
    %131 = vector.load %arg6[%c0_35, %c0_36] : memref<128x128xbf16, #tpu.memory_space<vmem>>, vector<128x128xbf16>
    %cst_37 = arith.constant dense<0.000000e+00> : vector<8x128xf32>
    %132 = tpu.matmul %130, %131, %cst_37 {dimension_numbers = #tpu.dot_dimension_numbers<[1], [0], [0], [1], [0, 0, 1, 1], [], []>} : vector<8x128xbf16>, vector<128x128xbf16>, vector<8x128xf32> -> vector<8x128xf32>
    %133 = arith.addf %1, %132 : vector<8x128xf32>
    %c0_38 = arith.constant 0 : index
    %c0_39 = arith.constant 0 : index
    %c0_40 = arith.constant 0 : index
    %134 = vector.load %arg7[%c0_38, %c0_39, %c0_40] : memref<1x8x128xf32, #tpu.memory_space<vmem>>, vector<1x8x128xf32>
    %135 = vector.shape_cast %134 : vector<1x8x128xf32> to vector<8x128xf32>
    %136 = vector.shape_cast %133 : vector<8x128xf32> to vector<1x8x128xf32>
    tpu.vector_store %arg7[%c0_38, %c0_39, %c0_40], %136 {strides = array<i32>} : memref<1x8x128xf32, #tpu.memory_space<vmem>>, vector<1x8x128xf32>,
    return
  }
  func.func @transform_0(%arg0: i32) -> (i32, i32, i32) {
    %c0_i32 = arith.constant 0 : i32
    %c0_i32_0 = arith.constant 0 : i32
    %c0_i32_1 = arith.constant 0 : i32
    return %arg0, %c0_i32, %c0_i32_0 : i32, i32, i32
  }
  func.func @transform_1(%arg0: i32) -> (i32, i32) {
    %c0_i32 = arith.constant 0 : i32
    %c0_i32_0 = arith.constant 0 : i32
    %c0_i32_1 = arith.constant 0 : i32
    return %c0_i32, %c0_i32_0 : i32, i32
  }
  func.func @transform_2(%arg0: i32) -> (i32, i32) {
    %c0_i32 = arith.constant 0 : i32
    %c0_i32_0 = arith.constant 0 : i32
    %c0_i32_1 = arith.constant 0 : i32
    return %c0_i32, %c0_i32_0 : i32, i32
  }
  func.func @transform_3(%arg0: i32) -> (i32, i32) {
    %c0_i32 = arith.constant 0 : i32
    %c0_i32_0 = arith.constant 0 : i32
    %c0_i32_1 = arith.constant 0 : i32
    return %c0_i32, %c0_i32_0 : i32, i32
  }
  func.func @transform_4(%arg0: i32) -> (i32, i32) {
    %c0_i32 = arith.constant 0 : i32
    %c0_i32_0 = arith.constant 0 : i32
    %c0_i32_1 = arith.constant 0 : i32
    return %c0_i32, %c0_i32_0 : i32, i32
  }
  func.func @transform_5(%arg0: i32) -> (i32, i32) {
    %c0_i32 = arith.constant 0 : i32
    %c0_i32_0 = arith.constant 0 : i32
    %c0_i32_1 = arith.constant 0 : i32
    return %c0_i32, %c0_i32_0 : i32, i32
  }
  func.func @transform_6(%arg0: i32) -> (i32, i32, i32) {
    %c0_i32 = arith.constant 0 : i32
    %c0_i32_0 = arith.constant 0 : i32
    %c0_i32_1 = arith.constant 0 : i32
    return %arg0, %c0_i32, %c0_i32_0 : i32, i32, i32
  }
}

</mosaic_0001>

<bundles_post_ra>
// kernel: llama_forward.9
= control target key start
LH: loop header
LB: loop body
LE: loop exit
PB: predicated region body
PF: predicated region fallthrough
CT: control target
= control target key end

     0   :  { %s127_s0 = inlined_call_operand.vmem [shape: f32[16,128], index: 0, kind: input, shape index: {}]   ;;  %s128_s1 = inlined_call_operand.vmem [shape: f32[1,128], index: 1, kind: input, shape index: {}]   ;;  %s129_s2 = inlined_call_operand.hbm [shape: f32[16,128], index: 2, kind: output, shape index: {}]  }
   0x1   :  { %v12_v0 = vld [vmem:[%s127_s0] sm:$0xff]  ;;  %v13_v1 = vld [vmem:[%s127_s0 + $0x8] sm:$0xff] }
   0x2   :  { %7 = vsyncpa [#allocation3], 0  ;;  %v14_v2 = vmul.f32 %v12_v0, %v12_v0  ;;  %v15_v3 = vmul.f32 %v13_v1, %v13_v1  ;;  %v56_v11 = vld [vmem:[%s128_s1] ss:$0 sm:$0xff]  ;;  %s88_s0 = smov [#allocation2]  }
   0x3   :  { %s45_s15 = sshll.u32 %s88_s0, 4  ;;  %s46_s15 = int_to_ptr.vmem [resolvable:$true] %s45_s15 }
   0x4   :  { %16 = vadd.xlane.f32.xlu0 %v14_v2  ;;  %s64_s16 = scalar_lea.vmem %s46_s15, 256  ;;  %p69_p1 = scmp.lt.s32.totalorder %s46_s15, %s46_s15 }
   0x5   :  { %p65_p0 = scmp.ne.s32.totalorder %s46_s15, %s64_s16  ;;  %p70_p2 = scmp.lt.s32.totalorder %s64_s16, %s64_s16 }
   0x7   :  { %p71_p3 = por %p70_p2, %p69_p1 }
   0x8   :  { %18 = vadd.xlane.f32.xlu0 %v15_v3 }
   0x9   :  { %p72_p4 = pnand %p71_p3, %p65_p0 }
  0x91   :  { %v17_v4 = vpop.xlane.xlu0 %16 }
  0x92   :  { %v21_v5 = vmul.f32 0.0078125, %v17_v4 }
  0x94   :  { %v23_v6 = vadd.f32 1e-05, %v21_v5 }
  0x95   :  { %v19_v7 = vpop.xlane.xlu0 %18 }
  0x96   :  { %60 = vrsqrt.f32 %v23_v6  ;;  %v22_v8 = vmul.f32 0.0078125, %v19_v7 }
  0x98   :  { %v24_v9 = vadd.f32 1e-05, %v22_v8 }
  0x9a   :  { %62 = vrsqrt.f32 %v24_v9 }
  0xa0   :  { %v61_v10 = vpop.eup %60 }
  0xa1   :  { %v27_v12 = vmul.f32 %v61_v10, %v12_v0 }
  0xa3   :  { %v36_v13 = vmul.f32 %v56_v11, %v27_v12 }
  0xa4   :  { %v63_v14 = vpop.eup %62 }
  0xa5   :  { %v28_v15 = vmul.f32 %v63_v14, %v13_v1  ;;  %38 = vst [vmem:[#allocation2] sm:$0xff] %v36_v13 }
  0xa7   :  { %v37_v16 = vmul.f32 %v56_v11, %v28_v15 }
  0xa9   :  { %39 = vst [vmem:[#allocation2 + $0x8] sm:$0xff] %v37_v16 }
  0xaa   :  { %75 = shalt.err (!%p72_p4)
}
  0xab   :  { %s76_s1 = scalar_lea.hbm %s129_s2, 256 }
  0xac   :  { %p77_p5 = scmp.ne.s32.totalorder %s129_s2, %s76_s1  ;;  %p80_p6 = scmp.lt.u32.totalorder %s76_s1, %s129_s2 }
  0xae   :  { %p82_p7 = pnand %p80_p6, %p77_p5 }
  0xb0   :  { %85 = shalt.err (!%p82_p7)
}
  0xb1   :  { %s89_s23 = smov 128   ;;  %s90_s24 = smov 8  }
  0xb2   :  { %51 = dma.vmem_to_hbm [thread:$0]  %s46_s15, 256, %s129_s2, [#allocation3], %s89_s23, %s89_s23, %s90_s24  }
  0xb3   :  { %86 = dma.done.wait [#allocation3], 256  }
  0xb4   :  { %87 = vsyncadd [#allocation3], 4294967040 }
  0xb5   :  { %55 = vsyncpa [#allocation3], 1 }

// kernel: llama_forward.6
= control target key start
LH: loop header
LB: loop body
LE: loop exit
PB: predicated region body
PF: predicated region fallthrough
CT: control target
= control target key end

     0   :  { %v689_v30 = vmov 0   ;;  %s891_s0 = inlined_call_operand.vmem [shape: f32[16,128], index: 0, kind: input, shape index: {}]   ;;  %s892_s2 = inlined_call_operand.vmem [shape: bf16[128,256], index: 2, kind: input, shape index: {}]   ;;  %s893_s3 = inlined_call_operand.vmem [shape: bf16[128,256], index: 3, kind: input, shape index: {}]   ;;  %s894_s1 = inlined_call_operand.vmem [shape: f32[1,128], index: 1, kind: input, shape index: {}]   ;;  %s895_s4 = inlined_call_operand.vmem [shape: bf16[256,128], index: 4, kind: input, shape index: {}]   ;;  %s896_s5 = inlined_call_operand.vmem [shape: f32[16,128], index: 5, kind: output, shape index: {}]  }
   0x1   :  { %v723_v0 = vld [vmem:[%s891_s0] sm:$0xff]  ;;  %v728_v1 = vld [vmem:[%s891_s0 + $0x8] sm:$0xff]  ;;  %v611_v8 = vld [vmem:[%s892_s2 + $0x14] ss:$8 sps:$4 sm:$0xff]   ;;  %176 = vmatprep.mubr.bf16.mxu0 %v689_v30  ;;  %315 = vmatprep.mubr.bf16.mxu1 %v689_v30 }
   0x2   :  { %v23_v2 = vmul.f32 %v723_v0, %v723_v0  ;;  %v605_v3 = vld [vmem:[%s892_s2 + $0x4] ss:$8 sps:$4 sm:$0xff]   ;;  %v609_v5 = vld [vmem:[%s892_s2] ss:$8 sps:$4 sm:$0xff]   ;;  %v24_v6 = vmul.f32 %v728_v1, %v728_v1  ;;  %v613_v9 = vld [vmem:[%s893_s3 + $0x14] ss:$8 sps:$4 sm:$0xff]  }
   0x3   :  { %v607_v4 = vld [vmem:[%s893_s3 + $0x4] ss:$8 sps:$4 sm:$0xff]   ;;  %144 = vmatprep.subr.bf16.mxu0 %v605_v3  ;;  %v610_v7 = vld [vmem:[%s893_s3] ss:$8 sps:$4 sm:$0xff]   ;;  %v615_v10 = vld [vmem:[%s892_s2 + $0x10] ss:$8 sps:$4 sm:$0xff]  }
   0x4   :  { %25 = vadd.xlane.f32.xlu0 %v23_v2  ;;  %283 = vmatprep.subr.bf16.mxu1 %v607_v4  ;;  %v616_v11 = vld [vmem:[%s893_s3 + $0x10] ss:$8 sps:$4 sm:$0xff]   ;;  %v617_v12 = vld [vmem:[%s892_s2 + $0x24] ss:$8 sps:$4 sm:$0xff]   ;;  %v621_v14 = vld [vmem:[%s892_s2 + $0x20] ss:$8 sps:$4 sm:$0xff]  }
   0x5   :  { %145 = vmatpush1.bf16.msra.mxu0 %v609_v5  ;;  %284 = vmatpush1.bf16.msra.mxu1 %v610_v7  ;;  %v619_v13 = vld [vmem:[%s893_s3 + $0x24] ss:$8 sps:$4 sm:$0xff]   ;;  %v622_v15 = vld [vmem:[%s893_s3 + $0x20] ss:$8 sps:$4 sm:$0xff]   ;;  %v623_v16 = vld [vmem:[%s892_s2 + $0x34] ss:$8 sps:$4 sm:$0xff]  }
   0x6   :  { %146 = vmatprep.subr.bf16.mxu0 %v611_v8  ;;  %285 = vmatprep.subr.bf16.mxu1 %v613_v9  ;;  %v625_v17 = vld [vmem:[%s893_s3 + $0x34] ss:$8 sps:$4 sm:$0xff]   ;;  %v627_v18 = vld [vmem:[%s892_s2 + $0x30] ss:$8 sps:$4 sm:$0xff]   ;;  %v629_v20 = vld [vmem:[%s892_s2 + $0x44] ss:$8 sps:$4 sm:$0xff]  }
   0x7   :  { %v628_v19 = vld [vmem:[%s893_s3 + $0x30] ss:$8 sps:$4 sm:$0xff]   ;;  %v631_v21 = vld [vmem:[%s893_s3 + $0x44] ss:$8 sps:$4 sm:$0xff]   ;;  %v633_v22 = vld [vmem:[%s892_s2 + $0x40] ss:$8 sps:$4 sm:$0xff]  }
   0x8   :  { %27 = vadd.xlane.f32.xlu0 %v24_v6  ;;  %v634_v23 = vld [vmem:[%s893_s3 + $0x40] ss:$8 sps:$4 sm:$0xff]   ;;  %v635_v24 = vld [vmem:[%s892_s2 + $0x54] ss:$8 sps:$4 sm:$0xff]   ;;  %v639_v26 = vld [vmem:[%s892_s2 + $0x50] ss:$8 sps:$4 sm:$0xff]  }
   0x9   :  { %147 = vmatpush1.bf16.msra.mxu0 %v615_v10  ;;  %286 = vmatpush1.bf16.msra.mxu1 %v616_v11  ;;  %v637_v25 = vld [vmem:[%s893_s3 + $0x54] ss:$8 sps:$4 sm:$0xff]   ;;  %v640_v27 = vld [vmem:[%s893_s3 + $0x50] ss:$8 sps:$4 sm:$0xff]   ;;  %v641_v28 = vld [vmem:[%s892_s2 + $0x64] ss:$8 sps:$4 sm:$0xff]  }
   0xa   :  { %148 = vmatprep.subr.bf16.mxu0 %v617_v12  ;;  %287 = vmatprep.subr.bf16.mxu1 %v619_v13  ;;  %v643_v29 = vld [vmem:[%s893_s3 + $0x64] ss:$8 sps:$4 sm:$0xff]   ;;  %v645_v31 = vld [vmem:[%s892_s2 + $0x60] ss:$8 sps:$4 sm:$0xff]   ;;  %v647_v33 = vld [vmem:[%s892_s2 + $0x74] ss:$8 sps:$4 sm:$0xff]  }
   0xb   :  { %v646_v32 = vld [vmem:[%s893_s3 + $0x60] ss:$8 sps:$4 sm:$0xff]   ;;  %v649_v34 = vld [vmem:[%s893_s3 + $0x74] ss:$8 sps:$4 sm:$0xff]   ;;  %v651_v35 = vld [vmem:[%s892_s2 + $0x70] ss:$8 sps:$4 sm:$0xff]  }
   0xc   :  { %v652_v36 = vld [vmem:[%s893_s3 + $0x70] ss:$8 sps:$4 sm:$0xff]   ;;  %v533_v46 = vld [vmem:[%s894_s1] ss:$0 sm:$0xff]  ;;  %v655_v53 = vld [vmem:[%s895_s4 + $0x48] sm:$0xff]  }
   0xd   :  { %149 = vmatpush1.bf16.msra.mxu0 %v621_v14  ;;  %288 = vmatpush1.bf16.msra.mxu1 %v622_v15  ;;  %v653_v51 = vld [vmem:[%s895_s4 + $0x40] sm:$0xff]   ;;  %v656_v54 = vld [vmem:[%s895_s4 + $0x8] sm:$0xff]   ;;  %v657_v55 = vld [vmem:[%s895_s4 + $0x50] sm:$0xff]  }
   0xe   :  { %150 = vmatprep.subr.bf16.mxu0 %v623_v16  ;;  %289 = vmatprep.subr.bf16.mxu1 %v625_v17  ;;  %v654_v52 = vld [vmem:[%s895_s4] sm:$0xff]   ;;  %v658_v56 = vld [vmem:[%s895_s4 + $0x10] sm:$0xff]   ;;  %v659_v57 = vld [vmem:[%s895_s4 + $0x58] sm:$0xff]  }
   0xf   :  { %v660_v58 = vld [vmem:[%s895_s4 + $0x18] sm:$0xff]   ;;  %v661_v59 = vld [vmem:[%s895_s4 + $0x60] sm:$0xff]   ;;  %v663_v61 = vld [vmem:[%s895_s4 + $0x68] sm:$0xff]  }
  0x10   :  { %v662_v60 = vld [vmem:[%s895_s4 + $0x20] sm:$0xff]   ;;  %v664_v62 = vld [vmem:[%s895_s4 + $0x28] sm:$0xff]   ;;  %v665_v63 = vld [vmem:[%s895_s4 + $0x70] sm:$0xff]  }
  0x11   :  { %151 = vmatpush1.bf16.msra.mxu0 %v627_v18  ;;  %290 = vmatpush1.bf16.msra.mxu1 %v628_v19  ;;  %v666_v2 = vld [vmem:[%s895_s4 + $0x30] sm:$0xff]   ;;  %v667_v3 = vld [vmem:[%s895_s4 + $0x78] sm:$0xff]  }
  0x12   :  { %152 = vmatprep.subr.bf16.mxu0 %v629_v20  ;;  %291 = vmatprep.subr.bf16.mxu1 %v631_v21  ;;  %v668_v4 = vld [vmem:[%s895_s4 + $0x38] sm:$0xff]  }
  0x15   :  { %153 = vmatpush1.bf16.msra.mxu0 %v633_v22  ;;  %292 = vmatpush1.bf16.msra.mxu1 %v634_v23 }
  0x16   :  { %154 = vmatprep.subr.bf16.mxu0 %v635_v24  ;;  %293 = vmatprep.subr.bf16.mxu1 %v637_v25 }
  0x19   :  { %155 = vmatpush1.bf16.msra.mxu0 %v639_v26  ;;  %294 = vmatpush1.bf16.msra.mxu1 %v640_v27 }
  0x1a   :  { %156 = vmatprep.subr.bf16.mxu0 %v641_v28  ;;  %295 = vmatprep.subr.bf16.mxu1 %v643_v29 }
  0x1d   :  { %157 = vmatpush1.bf16.msra.mxu0 %v645_v31  ;;  %296 = vmatpush1.bf16.msra.mxu1 %v646_v32 }
  0x1e   :  { %158 = vmatprep.subr.bf16.mxu0 %v647_v33  ;;  %297 = vmatprep.subr.bf16.mxu1 %v649_v34 }
  0x21   :  { %159 = vmatpush1.bf16.msra.mxu0 %v651_v35  ;;  %298 = vmatpush1.bf16.msra.mxu1 %v652_v36 }
  0x22   :  { %582 = vmatprep.subr.bf16.mxu0 %v653_v51 }
  0x91   :  { %v26_v37 = vpop.xlane.xlu0 %25 }
  0x92   :  { %v30_v38 = vmul.f32 0.0078125, %v26_v37 }
  0x94   :  { %v32_v39 = vadd.f32 1e-05, %v30_v38 }
  0x95   :  { %v28_v40 = vpop.xlane.xlu0 %27 }
  0x96   :  { %669 = vrsqrt.f32 %v32_v39  ;;  %v31_v41 = vmul.f32 0.0078125, %v28_v40 }
  0x98   :  { %v33_v42 = vadd.f32 1e-05, %v31_v41 }
  0x9a   :  { %671 = vrsqrt.f32 %v33_v42 }
  0xa0   :  { %v670_v43 = vpop.eup %669 }
  0xa1   :  { %v36_v44 = vmul.f32 %v670_v43, %v723_v0 }
  0xa3   :  { %v45_v48 = vmul.f32 %v533_v46, %v36_v44 }
  0xa4   :  { %v672_v45 = vpop.eup %671 }
  0xa5   :  { %v37_v47 = vmul.f32 %v672_v45, %v728_v1 }
  0xa7   :  { %v46_v49 = vmul.f32 %v533_v46, %v37_v47 }
  0xa9   :  { %v47_v50 = vpack.c.bf16 %v46_v49, %v45_v48 }
  0xab   :  { %177 = vmatmul.mubr.bf16.vlgmr.msra.gmra.mrb[0].mxu0 %v47_v50  ;;  %316 = vmatmul.mubr.bf16.vlgmr.msra.gmra.mrb[0].mxu1 %v47_v50 }
  0xac   :  { %583 = vmatpush3.bf16.msra.mxu0 %v654_v52 }
  0xad   :  { %584 = vmatprep.subr.bf16.mxu0 %v655_v53 }
  0xb0   :  { %585 = vmatpush3.bf16.msra.mxu0 %v656_v54 }
  0xb1   :  { %586 = vmatprep.subr.bf16.mxu0 %v657_v55 }
  0xb4   :  { %587 = vmatpush3.bf16.msra.mxu0 %v658_v56 }
  0xb5   :  { %588 = vmatprep.subr.bf16.mxu0 %v659_v57 }
  0xb8   :  { %589 = vmatpush3.bf16.msra.mxu0 %v660_v58 }
  0xb9   :  { %590 = vmatprep.subr.bf16.mxu0 %v661_v59 }
  0xbc   :  { %591 = vmatpush3.bf16.msra.mxu0 %v662_v60 }
  0xbd   :  { %592 = vmatprep.subr.bf16.mxu0 %v663_v61 }
  0xc0   :  { %593 = vmatpush3.bf16.msra.mxu0 %v664_v62 }
  0xc1   :  { %594 = vmatprep.subr.bf16.mxu0 %v665_v63 }
  0xc4   :  { %595 = vmatpush3.bf16.msra.mxu0 %v666_v2 }
  0xc5   :  { %596 = vmatprep.subr.bf16.mxu0 %v667_v3 }
  0xc8   :  { %597 = vmatpush3.bf16.msra.mxu0 %v668_v4 }
 0x17e   :  { %v178_v5 = vpop.f32.mrb[0].mxu0  ;;  %v317_v6 = vpop.f32.mrb[0].mxu1 }
 0x17f   :  { %v326_v7 = vsub.f32 0.0, %v178_v5  ;;  %v180_v8 = vpop.f32.mrb[1].mxu0  ;;  %v319_v9 = vpop.f32.mrb[1].mxu1 }
 0x180   :  { %v327_v10 = vsub.f32 0.0, %v180_v8  ;;  %v182_v11 = vpop.f32.mrb[2].mxu0  ;;  %v321_v12 = vpop.f32.mrb[2].mxu1 }
 0x181   :  { %v330_v13 = vmul.f32 1.442695, %v326_v7  ;;  %v328_v14 = vsub.f32 0.0, %v182_v11  ;;  %v184_v15 = vpop.f32.mrb[3].mxu0  ;;  %v323_v16 = vpop.f32.mrb[3].mxu1 }
 0x182   :  { %v332_v17 = vmul.f32 1.442695, %v327_v10  ;;  %v329_v18 = vsub.f32 0.0, %v184_v15 }
 0x183   :  { %673 = vpow2.f32 %v330_v13  ;;  %v334_v19 = vmul.f32 1.442695, %v328_v14 }
 0x184   :  { %675 = vpow2.f32 %v332_v17  ;;  %v336_v20 = vmul.f32 1.442695, %v329_v18 }
 0x185   :  { %677 = vpow2.f32 %v334_v19 }
 0x186   :  { %679 = vpow2.f32 %v336_v20 }
 0x18d   :  { %v674_v21 = vpop.eup %673 }
 0x18e   :  { %v676_v22 = vpop.eup %675  ;;  %v338_v23 = vadd.f32 1.0, %v674_v21 }
 0x18f   :  { %v678_v24 = vpop.eup %677  ;;  %v339_v25 = vadd.f32 1.0, %v676_v22 }
 0x190   :  { %v680_v26 = vpop.eup %679  ;;  %681 = vrcp.f32 %v338_v23  ;;  %v340_v27 = vadd.f32 1.0, %v678_v24 }
 0x191   :  { %683 = vrcp.f32 %v339_v25  ;;  %v341_v28 = vadd.f32 1.0, %v680_v26 }
 0x192   :  { %685 = vrcp.f32 %v340_v27 }
 0x193   :  { %687 = vrcp.f32 %v341_v28 }
 0x19a   :  { %v682_v29 = vpop.eup %681 }
 0x19b   :  { %v684_v30 = vpop.eup %683  ;;  %v346_v31 = vmul.f32 %v682_v29, %v178_v5 }
 0x19c   :  { %v686_v32 = vpop.eup %685  ;;  %v347_v33 = vmul.f32 %v684_v30, %v180_v8 }
 0x19d   :  { %v688_v34 = vpop.eup %687  ;;  %v350_v35 = vmul.f32 %v346_v31, %v317_v6  ;;  %v348_v36 = vmul.f32 %v686_v32, %v182_v11 }
 0x19e   :  { %v351_v37 = vmul.f32 %v347_v33, %v319_v9  ;;  %v349_v38 = vmul.f32 %v688_v34, %v184_v15 }
 0x19f   :  { %v352_v39 = vmul.f32 %v348_v36, %v321_v12 }
 0x1a0   :  { %v353_v40 = vmul.f32 %v349_v38, %v323_v16 }
 0x1a1   :  { %v354_v41 = vpack.c.bf16 %v352_v39, %v350_v35 }
 0x1a2   :  { %v355_v42 = vpack.c.bf16 %v353_v40, %v351_v37 }
 0x1a4   :  { %516 = vmatprep.mubr.bf16.mxu0 %v355_v42 }
 0x1a5   :  { %517 = vmatmul.mubr.bf16.vlgmr.msra.gmra.mrb[4].mxu0 %v354_v41 }
 0x278   :  { %v598_v43 = vpop.f32.mrb[4].mxu0 }
 0x279   :  { %v599_v44 = vpop.f32.mrb[5].mxu0 }
 0x27a   :  { %v600_v45 = vadd.f32 %v599_v44, %v598_v43  ;;  %v601_v46 = vpop.f32.mrb[6].mxu0 }
 0x27b   :  { %v602_v47 = vpop.f32.mrb[7].mxu0 }
 0x27c   :  { %v525_v48 = vadd.f32 %v600_v45, %v723_v0  ;;  %v603_v49 = vadd.f32 %v602_v47, %v601_v46 }
 0x27e   :  { %527 = vst [vmem:[%s896_s5] sm:$0xff] %v525_v48  ;;  %v526_v50 = vadd.f32 %v603_v49, %v728_v1 }
 0x280   :  { %528 = vst [vmem:[%s896_s5 + $0x8] sm:$0xff] %v526_v50 }

// kernel: llama_forward.5
= control target key start
LH: loop header
LB: loop body
LE: loop exit
PB: predicated region body
PF: predicated region fallthrough
CT: control target
= control target key end

     0   :  { %11 = vsyncpa [#allocation3], 0  ;;  %s1271_s21 = smov 0   ;;  %s1503_s0 = inlined_call_operand.vmem [shape: f32[2,8,128], index: 0, kind: input, shape index: {}]   ;;  %s1504_s1 = inlined_call_operand.vmem [shape: f32[8,32], index: 1, kind: input, shape index: {}]   ;;  %s1505_s2 = inlined_call_operand.vmem [shape: f32[8,32], index: 2, kind: input, shape index: {}]   ;;  %s1506_s3 = inlined_call_operand.vmem [shape: f32[1,128], index: 3, kind: input, shape index: {}]   ;;  %s1507_s4 = inlined_call_operand.vmem [shape: bf16[128,256], index: 4, kind: input, shape index: {}]   ;;  %s1508_s5 = inlined_call_operand.hbm [shape: bf16[128,128], index: 5, kind: input, shape index: {}]   ;;  %s1509_s6 = inlined_call_operand.vmem [shape: f32[2,8,128], index: 6, kind: output, shape index: {}]  }
   0x1 LB: > { %s1277_s22 = sadd.s32 4294967295, %s1220_s21   ;;  %p993_p0 = scmp.ge.s32.totalorder %s1220_s21, 1  ;;  %s1220_s21 = sphi %s1271_s21, %s17_s21  }
   0x2   : > { %p179_p1 = scmp.lt.s32.totalorder %s1220_s21, 3  ;;  %s1222_s23 = smov [#allocation2]  }
   0x3   : > { %s203_s24 = sshll.u32 %s1222_s23, 4  ;;  %p1510_p3 = scmp.eq.s32.totalorder %s1277_s22, 0  ;;  %s204_s24 = int_to_ptr.vmem [resolvable:$true] %s203_s24 }
   0x4   : > { %p1281_p2 = pnand %p993_p0, %p179_p1  ;;  %s1182_s29 = scalar_lea.hbm %s1508_s5, 1024 }
   0x5   : > { %p1183_p6 = scmp.ne.s32.totalorder %s1508_s5, %s1182_s29  ;;  %p1189_p10 = scmp.lt.u32.totalorder %s1182_s29, %s1508_s5 }
   0x6   : > { %s1512_s25 = scalar_select %p1281_p2, 1, 0 }
   0x7   : > { %p1096_p4 = pneg %p1281_p2 }
   0x9   : > { %p1290_p5 = pnand %p1510_p3, %p1096_p4 }
   0xb   : > { %p1184_p7 = pneg %p1290_p5 }
   0xd   : > { %p1185_p8 = pnand %p1184_p7, %p1183_p6 }
   0xf   : > { %p1186_p9 = pneg %p1185_p8 }
  0x11   : > { %p1191_p11 = pnand %p1189_p10, %p1186_p9 }
  0x13   : > { %1194 = shalt.err (!%p1191_p11)
}
  0x14   : > { %s1195_s10 = scalar_lea.vmem %s204_s24, 1024  ;;  %p1203_p1 = scmp.lt.s32.totalorder %s204_s24, %s204_s24 }
  0x15   : > { %p1196_p12 = scmp.ne.s32.totalorder %s204_s24, %s1195_s10  ;;  %p1204_p4 = scmp.lt.s32.totalorder %s1195_s10, %s1195_s10 }
  0x17   : > { %p1198_p13 = pnand %p1196_p12, %p1184_p7  ;;  %p1205_p3 = por %p1204_p4, %p1203_p1 }
  0x19   : > { %p1199_p0 = pneg %p1198_p13 }
  0x1b   : > { %p1206_p2 = pnand %p1205_p3, %p1199_p0 }
  0x1d   : > { %1209 = shalt.err (!%p1206_p2)
}
  0x1e   : > { %s1223_s11 = smov 64   ;;  %s1224_s12 = smov 4  }
  0x1f   : > { %1099 = dma.hbm_to_vmem [thread:$0]  (!%p1290_p5), %s1508_s5, 1024, %s204_s24, [#allocation3], %s1223_s11, %s1223_s11, %s1224_s12  }
  0x20   : > { %p1514_p6 = scmp.ne.s32.totalorder %s1512_s25, 0 }
  0x21   : > { %p1515_p8 = scmp.eq.s32.totalorder (!%p1514_p6), %s1277_s22, 0 }
  0x22   : > { %226 = sbr.rel (%p1514_p6) target bundleno = 2355 (0x933), region = 44 }
  0x29   : > { %1215 = dma.done.wait (%p1515_p8), [#allocation3], 1024   ;;  %p1516_p7 = pmov %p1515_p8 }
  0x2a   : > { %p254_p2 = scmp.lt.s32.totalorder %s1277_s22, 1  ;;  %v1124_v2 = vld [vmem:[%s1507_s4 + $0x4] ss:$8 sps:$4 sm:$0xff]   ;;  %v1126_v3 = vld [vmem:[%s1507_s4] ss:$8 sps:$4 sm:$0xff]   ;;  %v1225_v15 = vmov 0   ;;  %v420_v59 = vlaneseq }
  0x2b   : > { %1217 = vsyncadd (%p1516_p7), [#allocation3], 4294966272  ;;  %v1127_v4 = vld [vmem:[%s1507_s4 + $0x14] ss:$8 sps:$4 sm:$0xff]   ;;  %377 = vmatprep.subr.bf16.mxu0 %v1124_v2  ;;  %v1129_v5 = vld [vmem:[%s1507_s4 + $0x10] ss:$8 sps:$4 sm:$0xff]   ;;  %409 = vmatprep.mubr.bf16.mxu0 %v1225_v15 }
  0x2c   : > { %s1518_s22 = smov (!%p254_p2, %s1277_s22), 1  ;;  %378 = vmatpush1.bf16.msra.mxu0 %v1126_v3  ;;  %v1130_v6 = vld [vmem:[%s1507_s4 + $0x24] ss:$8 sps:$4 sm:$0xff]   ;;  %v1132_v7 = vld [vmem:[%s1507_s4 + $0x20] ss:$8 sps:$4 sm:$0xff]   ;;  %s1226_s10 = smov 16  }
  0x2d   : > { %s998_s15 = sshll.u32 %s1518_s22, 3  ;;  %379 = vmatprep.subr.bf16.mxu0 %v1127_v4  ;;  %v1133_v8 = vld [vmem:[%s1507_s4 + $0x34] ss:$8 sps:$4 sm:$0xff]   ;;  %v1135_v9 = vld [vmem:[%s1507_s4 + $0x30] ss:$8 sps:$4 sm:$0xff]   ;;  %s1227_s11 = smov 96  }
  0x2e   : > { %s257_s18 = scalar_lea.vmem %s1503_s0, %s998_s15  ;;  %v1136_v10 = vld [vmem:[%s1507_s4 + $0x44] ss:$8 sps:$4 sm:$0xff]   ;;  %v1138_v11 = vld [vmem:[%s1507_s4 + $0x40] ss:$8 sps:$4 sm:$0xff]   ;;  %v1139_v12 = vld [vmem:[%s1507_s4 + $0x54] ss:$8 sps:$4 sm:$0xff]   ;;  %s261_s26 = scalar_lea.vmem %s1509_s6, %s998_s15 }
  0x2f   : > { %v1326_v0 = vld [vmem:[%s257_s18] sm:$0xff]  ;;  %v1141_v13 = vld [vmem:[%s1507_s4 + $0x50] ss:$8 sps:$4 sm:$0xff]   ;;  %v1145_v17 = vld [vmem:[%s1507_s4 + $0x74] ss:$8 sps:$4 sm:$0xff]   ;;  %v1228_v31 = vmov 0.0  }
  0x30   : > { %v264_v1 = vmul.f32 %v1326_v0, %v1326_v0  ;;  %380 = vmatpush1.bf16.msra.mxu0 %v1129_v5  ;;  %v1142_v14 = vld [vmem:[%s1507_s4 + $0x64] ss:$8 sps:$4 sm:$0xff]   ;;  %v1144_v16 = vld [vmem:[%s1507_s4 + $0x60] ss:$8 sps:$4 sm:$0xff]   ;;  %v1147_v18 = vld [vmem:[%s1507_s4 + $0x70] ss:$8 sps:$4 sm:$0xff]   ;;  %1048 = vmatprep.subr.bf16.mxu1 %v1228_v31 }
  0x31   : > { %381 = vmatprep.subr.bf16.mxu0 %v1130_v6  ;;  %v1000_v23 = vld [vmem:[%s1506_s3] ss:$0 sm:$0xff]  ;;  %s1229_s12 = smov 112   ;;  %s1230_s13 = smov 48   ;;  %vm1231_vm0 = vmmov 0   ;;  %vm446_vm1 = vcmask 130048  }
  0x32   : > { %265 = vadd.xlane.f32.xlu0 %v264_v1  ;;  %1050 = vmatprep.mubr.msk.bf16.mxu1 %vm1231_vm0, %v1228_v31  ;;  %v418_v38 = vld [vmem:[%s1504_s1] sm:$0xff]  ;;  %s1232_s19 = smov 80   ;;  %vm470_vm2 = vcmask 261120   ;;  %v421_v60 = vshrl.u32 %v420_v59, 7  ;;  %v423_v61 = vand.u32 127, %v420_v59  ;;  %vm522_vm4 = vcmask 64512  }
  0x33   : > { %v1409_v39 = vld [vmem:[%s1505_s2] sm:$0xff]  ;;  %v1233_v63 = vmov -1e+30   ;;  %s1234_s20 = smov 32   ;;  %s1235_s23 = smov 64   ;;  %vm565_vm5 = vcmask 1043456  }
  0x34   : > { %382 = vmatpush1.bf16.msra.mxu0 %v1132_v7  ;;  %vm424_vm3 = vcmp.le.s32.totalorder %v423_v61, %v421_v60  ;;  %vm815_vm6 = vcmask 523264   ;;  %vm817_vm7 = vcmask 785408  }
  0x35   : > { %383 = vmatprep.subr.bf16.mxu0 %v1133_v8  ;;  %v1426_v1 = vsel %vm424_vm3, 0.0, %v1233_v63 }
  0x38   : > { %384 = vmatpush1.bf16.msra.mxu0 %v1135_v9 }
  0x39   : > { %385 = vmatprep.subr.bf16.mxu0 %v1136_v10 }
  0x3c   : > { %386 = vmatpush1.bf16.msra.mxu0 %v1138_v11 }
  0x3d   : > { %387 = vmatprep.subr.bf16.mxu0 %v1139_v12 }
  0x40   : > { %388 = vmatpush1.bf16.msra.mxu0 %v1141_v13 }
  0x41   : > { %389 = vmatprep.subr.bf16.mxu0 %v1142_v14 }
  0x44   : > { %390 = vmatpush1.bf16.msra.mxu0 %v1144_v16 }
  0x45   : > { %391 = vmatprep.subr.bf16.mxu0 %v1145_v17 }
  0x48   : > { %392 = vmatpush1.bf16.msra.mxu0 %v1147_v18 }
  0x49   : > { %1072 = vmatprep.subr.bf16.mxu0 %v1228_v31 }
  0xbf   : > { %v266_v19 = vpop.xlane.xlu0 %265 }
  0xc0   : > { %v268_v20 = vmul.f32 0.0078125, %v266_v19 }
  0xc2   : > { %v269_v21 = vadd.f32 1e-05, %v268_v20 }
  0xc4   : > { %1156 = vrsqrt.f32 %v269_v21 }
  0xce   : > { %v1157_v22 = vpop.eup %1156 }
  0xcf   : > { %v271_v24 = vmul.f32 %v1157_v22, %v1326_v0 }
  0xd1   : > { %v279_v25 = vmul.f32 %v1000_v23, %v271_v24 }
  0xd3   : > { %v280_v26 = vpack.c.bf16 %v279_v25, %v279_v25 }
  0xd5   : > { %410 = vmatmul.mubr.bf16.vlgmr.msra.gmra.mrb[0].mxu0 %v280_v26 }
  0xd6   : > { %1088 = vmatprep.mubr.msk.bf16.mxu0 %vm1231_vm0, %v1228_v31 }
 0x1a8   : > { %v1382_v27 = vpop.f32.mrb[0].mxu0 }
 0x1a9   : > { %440 = vrot.lane.b32.xlu1 %v1382_v27, %s1226_s10  ;;  %427 = vrot.lane.b32.xlu0 %v1382_v27, %s1227_s11  ;;  %v1387_v28 = vpop.f32.mrb[1].mxu0  ;;  %v430_v32 = vsub.f32 0.0, %v1382_v27  ;;  %v449_v42 = vmul.f32 %v418_v38, %v1382_v27 }
 0x1aa   : > { %v415_v29 = vpop.f32.mrb[2].mxu0  ;;  %v455_v33 = vsub.f32 0.0, %v1387_v28  ;;  %v465_v48 = vmul.f32 %v418_v38, %v1387_v28 }
 0x1ab   : > { %v416_v30 = vpop.f32.mrb[3].mxu0 }
 0x1ad   : > { %645 = vrot.lane.b32.xlu0 %v1387_v28, %s1229_s12  ;;  %461 = vrot.lane.b32.xlu1 %v1387_v28, %s1226_s10 }
 0x1b1   : > { %610 = vrot.lane.b32.xlu0 %v430_v32, %s1230_s13  ;;  %434 = vrot.lane.b32.xlu1 %v430_v32, %s1229_s12 }
 0x1b5   : > { %457 = vrot.lane.b32.xlu1 %v455_v33, %s1229_s12 }
 0x21b   : > { %v441_v34 = vpop.permute.xlu1 %440  ;;  %v1395_v35 = vpop.permute.xlu0 %427 }
 0x21c   : > { %v431_v36 = vsub.f32 0.0, %v1395_v35  ;;  %v450_v55 = vmul.f32 %v1395_v35, %v418_v38 }
 0x21e   : > { %436 = vrot.lane.b32.xlu1 %v431_v36, %s1229_s12 }
 0x21f   : > { %v462_v37 = vpop.permute.xlu1 %461  ;;  %v646_v12 = vpop.permute.xlu0 %645 }
 0x222   : > { %442 = vrot.lane.b32.xlu1 %v1395_v35, %s1226_s10 }
 0x223   : > { %v435_v40 = vpop.permute.xlu1 %434  ;;  %v611_v16 = vpop.permute.xlu0 %610 }
 0x224   : > { %v447_v41 = vsel %vm446_vm1, %v435_v40, %v441_v34 }
 0x225   : > { %v451_v43 = vmul.f32 %v447_v41, %v1409_v39 }
 0x226   : > { %642 = vrot.lane.b32.xlu1 %v455_v33, %s1232_s19 }
 0x227   : > { %v453_v44 = vadd.f32 %v451_v43, %v449_v42  ;;  %v458_v45 = vpop.permute.xlu1 %457  ;;  %v1452_v43 = vpack.c.bf16 %v1387_v28, %v1387_v28 }
 0x228   : > { %v464_v46 = vsel %vm446_vm1, %v458_v45, %v462_v37 }
 0x229   : > { %v466_v47 = vmul.f32 %v464_v46, %v1409_v39 }
 0x22a   : > { %612 = vrot.lane.b32.xlu1 %v431_v36, %s1230_s13 }
 0x22b   : > { %v467_v49 = vadd.f32 %v466_v47, %v465_v48 }
 0x22d   : > { %v469_v50 = vpack.c.bf16 %v467_v49, %v467_v49 }
 0x22f   : > { %v475_v51 = vsel %vm470_vm2, %v469_v50, 0 }
 0x230   : > { %1049 = vmatpush3.bf16.xpose.msra.mxu1 %v475_v51 }
 0x231   : > { %1054 = vmatprep.subr.bf16.mxu1 %v1228_v31 }
 0x290   : > { %v437_v52 = vpop.permute.xlu1 %436 }
 0x294   : > { %v443_v53 = vpop.permute.xlu1 %442 }
 0x295   : > { %v448_v54 = vsel %vm446_vm1, %v437_v52, %v443_v53 }
 0x296   : > { %v452_v56 = vmul.f32 %v448_v54, %v1409_v39 }
 0x298   : > { %v454_v57 = vadd.f32 %v452_v56, %v450_v55  ;;  %v643_v11 = vpop.permute.xlu1 %642 }
 0x299   : > { %v648_v13 = vsel %vm446_vm1, %v643_v11, %v646_v12 }
 0x29a   : > { %v468_v58 = vpack.c.bf16 %v454_v57, %v453_v44  ;;  %v653_v14 = vmul.f32 %v648_v13, %v1409_v39 }
 0x29c   : > { %1051 = vmatmul.mubr.msk.bf16.vlgmr.msra.gmra.mrb[0].mxu1 %vm470_vm2, %v468_v58  ;;  %v613_v15 = vpop.permute.xlu1 %612 }
 0x29d   : > { %1056 = vmatprep.mubr.msk.bf16.mxu1 %vm1231_vm0, %v1228_v31 }
 0x36f   : > { %v511_v62 = vpop.f32.mrb[0].mxu1 }
 0x370   : > { %v518_v2 = vmul.f32 0.17677669, %v511_v62  ;;  %v1052_v3 = vpop.f32.mrb[1].mxu1 }
 0x371   : > { %v514_v4 = vpop.f32.mrb[2].mxu1 }
 0x372   : > { %v519_v5 = vmul.f32 0.17677669, %v514_v4  ;;  %v1053_v6 = vpop.f32.mrb[3].mxu1  ;;  %v520_v7 = vadd.f32 %v518_v2, %v1426_v1 }
 0x374   : > { %v523_v8 = vsel %vm522_vm4, %v520_v7, -inf  ;;  %v521_v9 = vadd.f32 %v519_v5, %v1426_v1 }
 0x375   : > { %524 = vmax.xlane.f32.xlu1 %v523_v8 }
 0x376   : > { %v526_v10 = vsel %vm522_vm4, %v521_v9, -inf }
 0x377   : > { %527 = vmax.xlane.f32.xlu0 %v526_v10 }
 0x386   : > { %616 = vrot.lane.b32.xlu1 %v1382_v27, %s1232_s19 }
 0x38a   : > { %649 = vrot.lane.b32.xlu1 %v418_v38, %s1234_s20 }
 0x38d   : > { %618 = vrot.lane.b32.xlu0 %v1395_v35, %s1232_s19 }
 0x38e   : > { %625 = vrot.lane.b32.xlu1 %v418_v38, %s1235_s23 }
 0x391   : > { %655 = vrot.lane.b32.xlu0 %v653_v14, %s1234_s20 }
 0x402   : > { %v525_v17 = vpop.xlane.xlu1 %524 }
 0x403   : > { %v529_v25 = vmax.f32 %v525_v17, 0.0 }
 0x404   : > { %v528_v18 = vpop.xlane.xlu0 %527 }
 0x405   : > { %v531_v26 = vsub.f32 %v520_v7, %v529_v25  ;;  %v530_v29 = vmax.f32 %v528_v18, 0.0 }
 0x406   : > { %v617_v19 = vpop.permute.xlu1 %616 }
 0x407   : > { %v622_v20 = vsel %vm446_vm1, %v611_v16, %v617_v19  ;;  %v533_v30 = vmul.f32 1.442695, %v531_v26  ;;  %v532_v32 = vsub.f32 %v521_v9, %v530_v29  ;;  %v544_v54 = vsub.f32 0.0, %v530_v29 }
 0x408   : > { %v619_v21 = vpop.permute.xlu0 %618  ;;  %v630_v22 = vmul.f32 %v622_v20, %v1409_v39 }
 0x409   : > { %v623_v23 = vsel %vm446_vm1, %v613_v15, %v619_v21  ;;  %1158 = vpow2.f32 %v533_v30  ;;  %v535_v33 = vmul.f32 1.442695, %v532_v32  ;;  %v547_v55 = vmul.f32 1.442695, %v544_v54 }
 0x40a   : > { %v631_v24 = vmul.f32 %v623_v23, %v1409_v39  ;;  %634 = vrot.lane.b32.xlu0 %v630_v22, %s1235_s23  ;;  %v650_v39 = vpop.permute.xlu1 %649 }
 0x40b   : > { %1160 = vpow2.f32 %v535_v33  ;;  %v652_v40 = vmul.f32 %v650_v39, %v1387_v28  ;;  %v543_v28 = vsub.f32 0.0, %v529_v25 }
 0x40c   : > { %636 = vrot.lane.b32.xlu1 %v631_v24, %s1235_s23  ;;  %v656_v41 = vpop.permute.xlu0 %655 }
 0x40d   : > { %v658_v42 = vadd.f32 %v656_v41, %v652_v40  ;;  %v545_v53 = vmul.f32 1.442695, %v543_v28 }
 0x40e   : > { %v626_v45 = vpop.permute.xlu1 %625 }
 0x40f   : > { %v660_v44 = vpack.c.bf16 %v658_v42, %v658_v42  ;;  %v628_v47 = vmul.f32 %v626_v45, %v1382_v27  ;;  %v629_v48 = vmul.f32 %v626_v45, %v1395_v35  ;;  %1162 = vpow2.f32 %v545_v53 }
 0x410   : > { %1164 = vpow2.f32 %v547_v55 }
 0x413   : > { %v1159_v34 = vpop.eup %1158 }
 0x414   : > { %v537_v36 = vsel %vm522_vm4, %v1159_v34, 0.0 }
 0x415   : > { %v1161_v37 = vpop.eup %1160 }
 0x416   : > { %v540_v38 = vsel %vm522_vm4, %v1161_v37, 0.0 }
 0x419   : > { %v1163_v56 = vpop.eup %1162 }
 0x41a   : > { %v549_v58 = vmul.f32 3.0, %v1163_v56  ;;  %v1165_v59 = vpop.eup %1164 }
 0x41b   : > { %v550_v61 = vmul.f32 3.0, %v1165_v59  ;;  %v1150_v59 = vld [vmem:[#allocation2 + $0x10] sm:$0xff]  }
 0x429   : > { %538 = vadd.xlane.f32.xlu0 %v537_v36 }
 0x430   : > { %541 = vadd.xlane.f32.xlu1 %v540_v38 }
 0x43f   : > { %560 = vrot.lane.b32.xlu0 %v1452_v43, %s1235_s23 }
 0x441   : > { %665 = vrot.lane.b32.xlu1 %v660_v44, %s1227_s11 }
 0x47c   : > { %v635_v46 = vpop.permute.xlu0 %634 }
 0x47d   : > { %v640_v50 = vadd.f32 %v635_v46, %v628_v47 }
 0x47e   : > { %v637_v49 = vpop.permute.xlu1 %636 }
 0x47f   : > { %v641_v51 = vadd.f32 %v637_v49, %v629_v48 }
 0x481   : > { %v659_v52 = vpack.c.bf16 %v641_v51, %v640_v50 }
 0x483   : > { %662 = vrot.lane.b32.xlu0 %v659_v52, %s1235_s23 }
 0x4b6   : > { %v539_v57 = vpop.xlane.xlu0 %538 }
 0x4b7   : > { %v551_v27 = vadd.f32 %v549_v58, %v539_v57  ;;  %v1148_v57 = vld [vmem:[#allocation2] sm:$0xff]   ;;  %v1149_v58 = vld [vmem:[#allocation2 + $0x8] sm:$0xff]  }
 0x4b8   : > { %1073 = vmatpush3.bf16.msra.mxu0 %v1148_v57 }
 0x4b9   : > { %1166 = vrcp.f32 %v551_v27  ;;  %1074 = vmatprep.subr.bf16.mxu0 %v1228_v31  ;;  %v1151_v27 = vld [vmem:[#allocation2 + $0x18] sm:$0xff]  }
 0x4ba   : > { %v561_v60 = vpop.permute.xlu0 %560 }
 0x4bb   : > { %v567_v35 = vsel %vm565_vm5, %v561_v60, 0  ;;  %v1152_v60 = vld [vmem:[#allocation2 + $0x20] sm:$0xff]  }
 0x4bc   : > { %1055 = vmatpush3.bf16.msra.mxu1 %v567_v35  ;;  %1075 = vmatpush3.bf16.msra.mxu0 %v1149_v58  ;;  %v1153_v35 = vld [vmem:[#allocation2 + $0x28] sm:$0xff]  }
 0x4bd   : > { %v542_v62 = vpop.xlane.xlu1 %541  ;;  %1060 = vmatprep.subr.bf16.mxu1 %v1228_v31  ;;  %1076 = vmatprep.subr.bf16.mxu0 %v1228_v31 }
 0x4be   : > { %v552_v63 = vadd.f32 %v550_v61, %v542_v62  ;;  %v1154_v61 = vld [vmem:[#allocation2 + $0x30] sm:$0xff]   ;;  %v1155_v62 = vld [vmem:[#allocation2 + $0x38] sm:$0xff]  }
 0x4c0   : > { %1168 = vrcp.f32 %v552_v63  ;;  %1077 = vmatpush3.bf16.msra.mxu0 %v1150_v59 }
 0x4c1   : > { %v666_v6 = vpop.permute.xlu1 %665  ;;  %1078 = vmatprep.subr.bf16.mxu0 %v1228_v31 }
 0x4c2   : > { %v671_v8 = vsel %vm470_vm2, %v666_v6, 0 }
 0x4c3   : > { %v1167_v2 = vpop.eup %1166 }
 0x4c4   : > { %v555_v4 = vmul.f32 %v1167_v2, %v1159_v34  ;;  %1079 = vmatpush3.bf16.msra.mxu0 %v1151_v27 }
 0x4c5   : > { %1080 = vmatprep.subr.bf16.mxu0 %v1228_v31 }
 0x4c8   : > { %1081 = vmatpush3.bf16.msra.mxu0 %v1152_v60 }
 0x4c9   : > { %1082 = vmatprep.subr.bf16.mxu0 %v1228_v31 }
 0x4ca   : > { %v1169_v3 = vpop.eup %1168 }
 0x4cb   : > { %v556_v5 = vmul.f32 %v1169_v3, %v1161_v37 }
 0x4cc   : > { %1083 = vmatpush3.bf16.msra.mxu0 %v1153_v35 }
 0x4cd   : > { %v557_v7 = vpack.c.bf16 %v556_v5, %v555_v4  ;;  %1084 = vmatprep.subr.bf16.mxu0 %v1228_v31 }
 0x4cf   : > { %1057 = vmatmul.mubr.msk.bf16.vlgmr.msra.gmra.mrb[4].mxu1 %vm522_vm4, %v557_v7 }
 0x4d0   : > { %1061 = vmatpush3.bf16.xpose.msra.mxu1 %v671_v8  ;;  %1062 = vmatprep.mubr.msk.bf16.mxu1 %vm1231_vm0, %v1228_v31 }
 0x4d1   : > { %1066 = vmatprep.subr.bf16.mxu1 %v1228_v31  ;;  %1085 = vmatpush3.bf16.msra.mxu0 %v1154_v61 }
 0x4d2   : > { %1086 = vmatprep.subr.bf16.mxu0 %v1228_v31 }
 0x4d5   : > { %1087 = vmatpush3.bf16.msra.mxu0 %v1155_v62 }
 0x4f5   : > { %v663_v9 = vpop.permute.xlu0 %662 }
 0x4f6   : > { %1063 = vmatmul.mubr.msk.bf16.vlgmr.msra.gmra.mrb[8].mxu1 %vm470_vm2, %v663_v9 }
 0x4f7   : > { %1068 = vmatprep.mubr.msk.bf16.mxu1 %vm1231_vm0, %v1228_v31 }
 0x5a2   : > { %v1470_v10 = vpop.f32.mrb[4].mxu1 }
 0x5a3   : > { %v1058_v11 = vpop.f32.mrb[5].mxu1 }
 0x5a4   : > { %v606_v12 = vpop.f32.mrb[6].mxu1 }
 0x5a5   : > { %v1059_v13 = vpop.f32.mrb[7].mxu1 }
 0x5c9   : > { %v707_v14 = vpop.f32.mrb[8].mxu1 }
 0x5ca   : > { %v714_v15 = vmul.f32 0.17677669, %v707_v14  ;;  %v1064_v16 = vpop.f32.mrb[9].mxu1 }
 0x5cb   : > { %v710_v17 = vpop.f32.mrb[10].mxu1 }
 0x5cc   : > { %v715_v18 = vmul.f32 0.17677669, %v710_v17  ;;  %v1065_v19 = vpop.f32.mrb[11].mxu1  ;;  %v716_v20 = vadd.f32 %v714_v15, %v1426_v1 }
 0x5ce   : > { %v718_v21 = vsel %vm522_vm4, %v716_v20, -inf  ;;  %v717_v22 = vadd.f32 %v715_v18, %v1426_v1 }
 0x5cf   : > { %719 = vmax.xlane.f32.xlu1 %v718_v21 }
 0x5d0   : > { %v721_v23 = vsel %vm522_vm4, %v717_v22, -inf }
 0x5d1   : > { %722 = vmax.xlane.f32.xlu0 %v721_v23 }
 0x65c   : > { %v720_v24 = vpop.xlane.xlu1 %719 }
 0x65d   : > { %v724_v25 = vmax.f32 %v720_v24, 0.0 }
 0x65e   : > { %v723_v26 = vpop.xlane.xlu0 %722 }
 0x65f   : > { %v726_v29 = vsub.f32 %v716_v20, %v724_v25  ;;  %v725_v30 = vmax.f32 %v723_v26, 0.0  ;;  %v738_v39 = vsub.f32 0.0, %v724_v25 }
 0x661   : > { %v728_v32 = vmul.f32 1.442695, %v726_v29  ;;  %v727_v33 = vsub.f32 %v717_v22, %v725_v30  ;;  %v739_v40 = vsub.f32 0.0, %v725_v30  ;;  %v740_v41 = vmul.f32 1.442695, %v738_v39 }
 0x663   : > { %1170 = vpow2.f32 %v728_v32  ;;  %v730_v34 = vmul.f32 1.442695, %v727_v33  ;;  %v742_v42 = vmul.f32 1.442695, %v739_v40 }
 0x665   : > { %1172 = vpow2.f32 %v730_v34 }
 0x666   : > { %1174 = vpow2.f32 %v740_v41 }
 0x667   : > { %1176 = vpow2.f32 %v742_v42 }
 0x66d   : > { %v1171_v36 = vpop.eup %1170 }
 0x66e   : > { %v732_v37 = vsel %vm522_vm4, %v1171_v36, 0.0 }
 0x66f   : > { %v1173_v38 = vpop.eup %1172  ;;  %733 = vadd.xlane.f32.xlu0 %v732_v37 }
 0x670   : > { %v735_v1 = vsel %vm522_vm4, %v1173_v38, 0.0  ;;  %v1175_v44 = vpop.eup %1174 }
 0x671   : > { %736 = vadd.xlane.f32.xlu1 %v735_v1  ;;  %v1177_v45 = vpop.eup %1176  ;;  %v744_v46 = vmul.f32 3.0, %v1175_v44 }
 0x672   : > { %v745_v49 = vmul.f32 3.0, %v1177_v45 }
 0x682   : > { %803 = vrot.lane.b32.xlu1 %v606_v12, %s1234_s20 }
 0x685   : > { %753 = vrot.lane.b32.xlu0 %v1452_v43, %s1234_s20 }
 0x6fc   : > { %v734_v47 = vpop.xlane.xlu0 %733 }
 0x6fd   : > { %v746_v48 = vadd.f32 %v744_v46, %v734_v47 }
 0x6fe   : > { %v737_v50 = vpop.xlane.xlu1 %736 }
 0x6ff   : > { %1178 = vrcp.f32 %v746_v48  ;;  %v747_v51 = vadd.f32 %v745_v49, %v737_v50 }
 0x700   : > { %v754_v52 = vpop.permute.xlu0 %753 }
 0x701   : > { %1180 = vrcp.f32 %v747_v51  ;;  %v759_v28 = vsel %vm565_vm5, %v754_v52, 0 }
 0x702   : > { %1067 = vmatpush3.bf16.msra.mxu1 %v759_v28  ;;  %v804_v5 = vpop.permute.xlu1 %803 }
 0x703   : > { %v814_v6 = vsel %vm470_vm2, %v1470_v10, %v804_v5 }
 0x709   : > { %v1179_v43 = vpop.eup %1178 }
 0x70a   : > { %v750_v54 = vmul.f32 %v1179_v43, %v1171_v36 }
 0x70b   : > { %v1181_v53 = vpop.eup %1180 }
 0x70c   : > { %v751_v55 = vmul.f32 %v1181_v53, %v1173_v38 }
 0x70e   : > { %v752_v56 = vpack.c.bf16 %v751_v55, %v750_v54 }
 0x710   : > { %1069 = vmatmul.mubr.msk.bf16.vlgmr.msra.gmra.mrb[12].mxu1 %vm522_vm4, %v752_v56 }
 0x7e3   : > { %v795_v63 = vpop.f32.mrb[12].mxu1 }
 0x7e4   : > { %807 = vrot.lane.b32.xlu1 %v795_v63, %s1235_s23  ;;  %v1070_v2 = vpop.f32.mrb[13].mxu1 }
 0x7e5   : > { %v798_v3 = vpop.f32.mrb[14].mxu1 }
 0x7e6   : > { %811 = vrot.lane.b32.xlu0 %v798_v3, %s1227_s11  ;;  %v1071_v4 = vpop.f32.mrb[15].mxu1 }
 0x856   : > { %v808_v7 = vpop.permute.xlu1 %807 }
 0x857   : > { %v816_v8 = vsel %vm815_vm6, %v814_v6, %v808_v7 }
 0x858   : > { %v812_v31 = vpop.permute.xlu0 %811 }
 0x859   : > { %v818_v9 = vsel %vm817_vm7, %v816_v8, %v812_v31 }
 0x85a   : > { %v819_v11 = vpack.c.bf16 %v818_v9, %v818_v9 }
 0x85c   : > { %1089 = vmatmul.mubr.bf16.vlgmr.msra.gmra.mrb[4].mxu0 %v819_v11 }
 0x92f   : > { %v918_v12 = vpop.f32.mrb[4].mxu0 }
 0x930   : > { %v924_v13 = vadd.f32 %v918_v12, %v1326_v0  ;;  %v1090_v14 = vpop.f32.mrb[5].mxu0 }
 0x931   : > { %v921_v15 = vpop.f32.mrb[6].mxu0 }
 0x932   : > { %925 = vst [vmem:[%s261_s26] sm:$0xff] %v924_v13  ;;  %v1091_v16 = vpop.f32.mrb[7].mxu0 }
 0x933 PF: > { %s17_s21 = sadd.s32 1, %s1220_s21  }
 0x934   : > { %p14_p3 = scmp.ge.s32.totalorder %s17_s21, 4  }
 0x936   :  { %16 = sbr.rel (!%p14_p3) target bundleno = 1 (0x1), region = 79 }
 0x93d   :  { %945 = vsyncpa [#allocation3], 1 }
 0x93e   :  { %947 = vsyncpa [#allocation3 + $0x1], 1 }

</bundles_post_ra>
